<compile_context>
chip_gen: v7x
topology: tpu7x:2x2x1
jax: 0.10.0
libtpu: 0.0.40
codegen_flags: <defaults>
</compile_context>

<pallas_src>
import functools

import jax
import jax.numpy as jnp
from jax import lax
from jax.experimental import pallas as pl
from jax.experimental.pallas import tpu as pltpu


def _round_up(v, m):
    return ((v + m - 1) // m) * m


def _pad_axis(a, axis, target):
    pad = target - a.shape[axis]
    if pad == 0:
        return a
    widths = [(0, 0)] * a.ndim
    widths[axis] = (0, pad)
    return jnp.pad(a, widths)


def _default_vmem_budget():
    """VMEM budget in bytes, derived from the chip when possible."""
    try:
        cap = int(pltpu.get_tpu_info().vmem_capacity_bytes)
        # Leave headroom for Mosaic internals; never request more than 100 MiB.
        return max(32 << 20, min(cap - (8 << 20), 100 << 20))
    except Exception:
        # Conservative default that is safe on every generation
        # (v7x has only 64 MiB physical VMEM per TensorCore).
        return 56 << 20


def _mlp_kernel(x_ref, w1_ref, b1_ref, w2_ref, b2_ref, o_ref, h_ref, *,
                block_n, w2_resident):
    """One (batch tile i, item-score tile j) grid step."""
    j = pl.program_id(1)

    @pl.when(j == 0)
    def _():
        # Layer 1 for this batch tile: h = relu(x @ W1^T + b1).
        # Computed once per batch tile; kept resident in VMEM scratch for all j.
        h = jnp.dot(x_ref[...], w1_ref[...], preferred_element_type=jnp.float32)
        h = jnp.maximum(h + b1_ref[...], 0.0)
        h_ref[...] = h.astype(h_ref.dtype)

    # Layer 2 for output tile j: sigmoid(h @ W2[j_tile]^T + b2[j_tile]).
    if w2_resident:
        start = pl.multiple_of(j * block_n, block_n)
        w2_rows = w2_ref[pl.ds(start, block_n), :]        # (block_n, E_p)
    else:
        w2_rows = w2_ref[...]                             # (block_n, E_p)
    s = lax.dot_general(h_ref[...], w2_rows,
                        dimension_numbers=(((1,), (1,)), ((), ())),
                        preferred_element_type=jnp.float32)
    s = s + b2_ref[...]
    o_ref[...] = jax.nn.sigmoid(s).astype(o_ref.dtype)


@functools.partial(
    jax.jit,
    static_argnames=("block_b", "block_n", "out_dtype", "w2_buffers",
                     "vmem_budget_bytes"))
def recsys_forward(x, w1, b1, w2, b2, *, block_b=128, block_n=2048,
                   out_dtype=jnp.bfloat16, w2_buffers=2,
                   vmem_budget_bytes=None):
    """RecSysModel forward.

    x  : (B, nb_items)  multi-hot basket vectors
    w1 : (E, nb_items)  fc_basket_encoder_1.weight (PyTorch layout)
    b1 : (E,)           fc_basket_encoder_1.bias
    w2 : (nb_items, E)  h2item_score.weight        (PyTorch layout)
    b2 : (nb_items,)    h2item_score.bias
    returns (B, nb_items) `out_dtype` next-item probabilities.
    """
    assert block_b % 8 == 0 and block_n % 128 == 0
    B, nb_items = x.shape
    E = w1.shape[0]
    if vmem_budget_bytes is None:
        vmem_budget_bytes = _default_vmem_budget()

    # TPU-friendly padded sizes.  Default bb=128 keeps >= 2 "parallel" batch
    # tiles for B >= 256 (both v7x TensorCores busy); on single-TC v5e/v6e,
    # block_b=256 halves W2 restreaming / layer-1 invocations.
    bb = min(block_b, _round_up(B, 8))            # do not over-pad tiny batches
    bn = block_n if nb_items >= block_n else _round_up(nb_items, 128)
    B_p = _round_up(B, bb)
    N_p = _round_up(nb_items, bn)
    E_p = _round_up(E, 128)

    # --- VMEM accounting: decide whether W2 stays fully resident, and derive
    # --- vmem_limit_bytes from the actual buffers instead of a fixed constant.
    out_itemsize = jnp.dtype(out_dtype).itemsize
    fixed_bytes = (2 * bb * N_p * 2                 # x tile (bf16, double buf)
                   + N_p * E_p * 2                  # resident W1^T (bf16)
                   + 8 * E_p * 4                    # b1 (sublane-padded, f32)
                   + 2 * 8 * bn * 4                 # b2 tiles (f32)
                   + 2 * bb * bn * out_itemsize     # output tiles
                   + bb * E_p * 2)                  # h scratch (bf16)
    w2_resident_bytes = N_p * E_p * 2
    w2_streamed_bytes = max(2, w2_buffers) * bn * E_p * 2
    headroom = 4 << 20
    w2_resident = fixed_bytes + w2_resident_bytes + headroom <= vmem_budget_bytes
    needed = fixed_bytes + (w2_resident_bytes if w2_resident
                            else w2_streamed_bytes)
    vmem_limit = min(vmem_budget_bytes,
                     max(32 << 20, int(needed * 1.25) + headroom))

    # Layout + dtype prep: bf16 operands (f32 accumulation happens in-kernel).
    # x is 0/1 multi-hot so the bf16 cast of x is exact.
    x_p = _pad_axis(_pad_axis(x, 1, N_p), 0, B_p).astype(jnp.bfloat16)      # (B_p, N_p)
    w1t = _pad_axis(_pad_axis(w1.T, 0, N_p), 1, E_p).astype(jnp.bfloat16)   # (N_p, E_p)
    w2p = _pad_axis(_pad_axis(w2, 0, N_p), 1, E_p).astype(jnp.bfloat16)     # (N_p, E_p)
    b1r = _pad_axis(b1.reshape(1, -1), 1, E_p).astype(jnp.float32)          # (1, E_p)
    b2r = _pad_axis(b2.reshape(1, -1), 1, N_p).astype(jnp.float32)          # (1, N_p)

    if w2_resident:
        # Constant block index -> VMEM resident, single buffer; sliced in-kernel.
        w2_spec = pl.BlockSpec((N_p, E_p), lambda i, j: (0, 0),
                               pipeline_mode=pl.Buffered(1))
    else:
        # Streamed over the output-item axis.  Bump w2_buffers to 3 on v5e if
        # the trace still shows exposed DMA on this stream.
        kw = {}
        if w2_buffers != 2:
            kw["pipeline_mode"] = pl.Buffered(w2_buffers)
        w2_spec = pl.BlockSpec((bn, E_p), lambda i, j: (j, 0), **kw)

    grid = (B_p // bb, N_p // bn)
    kernel = functools.partial(_mlp_kernel, block_n=bn, w2_resident=w2_resident)

    flops = 4 * B_p * N_p * E_p                                   # two matmuls
    bytes_accessed = ((x_p.size + w1t.size + w2p.size) * 2        # bf16 operands
                      + (b1r.size + b2r.size) * 4                 # f32 biases
                      + B_p * N_p * out_itemsize)                 # output

    out = pl.pallas_call(
        kernel,
        out_shape=jax.ShapeDtypeStruct((B_p, N_p), out_dtype),
        grid_spec=pltpu.PrefetchScalarGridSpec(
            num_scalar_prefetch=0,
            grid=grid,
            in_specs=[
                # x batch tile: full item width, re-fetched only when i changes.
                pl.BlockSpec((bb, N_p), lambda i, j: (i, 0)),
                # W1^T / b1: constant block index -> VMEM resident, single buffer.
                pl.BlockSpec((N_p, E_p), lambda i, j: (0, 0),
                             pipeline_mode=pl.Buffered(1)),
                pl.BlockSpec((1, E_p), lambda i, j: (0, 0),
                             pipeline_mode=pl.Buffered(1)),
                # W2: resident (sliced in-kernel) or streamed over j.
                w2_spec,
                # b2: streamed over the output-item axis.
                pl.BlockSpec((1, bn), lambda i, j: (0, j)),
            ],
            out_specs=pl.BlockSpec((bb, bn), lambda i, j: (i, j)),
            scratch_shapes=[pltpu.VMEM((bb, E_p), jnp.bfloat16)],   # resident h
        ),
        compiler_params=pltpu.CompilerParams(
            dimension_semantics=("parallel", "arbitrary"),
            vmem_limit_bytes=vmem_limit,
        ),
        cost_estimate=pl.CostEstimate(
            flops=flops,
            transcendentals=B_p * N_p,                 # sigmoid
            bytes_accessed=bytes_accessed,
        ),
    )(x_p, w1t, b1r, w2p, b2r)

    return out[:B, :nb_items]


def init_params(key, nb_items, embedding_dim):
    """Mirror RecSysModel.init_weight(): kaiming_uniform(relu) + zero bias for
    layer 1, xavier_uniform + zero bias for layer 2."""
    k1, k2 = jax.random.split(key)
    bound1 = jnp.sqrt(2.0) * jnp.sqrt(3.0 / nb_items)          # kaiming_uniform_
    w1 = jax.random.uniform(k1, (embedding_dim, nb_items), jnp.float32,
                            minval=-bound1, maxval=bound1)
    b1 = jnp.zeros((embedding_dim,), jnp.float32)
    bound2 = jnp.sqrt(6.0 / (embedding_dim + nb_items))        # xavier_uniform_
    w2 = jax.random.uniform(k2, (nb_items, embedding_dim), jnp.float32,
                            minval=-bound2, maxval=bound2)
    b2 = jnp.zeros((nb_items,), jnp.float32)
    return w1, b1, w2, b2


def reference_forward(x, w1, b1, w2, b2):
    h = jax.nn.relu(x @ w1.T + b1)
    return jax.nn.sigmoid(h @ w2.T + b2)


if __name__ == "__main__":
    # Small but MXU-meaningful shapes.
    batch = 256            # 2 batch tiles of 128 -> both TensorCores busy on v7x
    nb_items = 1000        # deliberately not a multiple of 128 (exercises padding)
    embedding_dim = 128

    key = jax.random.PRNGKey(0)
    kx, kp, kb1, kb2 = jax.random.split(key, 4)

    # Multi-hot basket vectors (~10% density).
    x = (jax.random.uniform(kx, (batch, nb_items)) > 0.9).astype(jnp.float32)

    w1, b1, w2, b2 = init_params(kp, nb_items, embedding_dim)
    # init_weight() zeroes the biases; use small non-zero biases here purely to
    # exercise the kernel's bias path (forward semantics are identical).
    b1 = 0.05 * jax.random.normal(kb1, b1.shape, jnp.float32)
    b2 = 0.05 * jax.random.normal(kb2, b2.shape, jnp.float32)

    out = recsys_forward(x, w1, b1, w2, b2)          # bf16 output, bn=1024 here
    out = jax.block_until_ready(out)

    ref = reference_forward(x, w1, b1, w2, b2)
    assert out.shape == (batch, nb_items)
    max_err = float(jnp.max(jnp.abs(out.astype(jnp.float32) - ref)))
    # bf16 operands + bf16 output with f32 accumulation -> loosened tolerance.
    assert max_err < 3e-2, f"mismatch vs reference (max abs err {max_err})"
    print("KERNEL_OK")
</pallas_src>

<mosaic_0001>
module attributes {stable_mosaic.version = 11 : i64} {
  func.func @_mlp_kernel(%arg0: i32, %arg1: i32, %arg2: memref<128x1024xbf16, #tpu.memory_space<vmem>>, %arg3: memref<1024x128xbf16, #tpu.memory_space<vmem>>, %arg4: memref<1x128xf32, #tpu.memory_space<vmem>>, %arg5: memref<1024x128xbf16, #tpu.memory_space<vmem>>, %arg6: memref<1x1024xf32, #tpu.memory_space<vmem>>, %arg7: memref<128x1024xbf16, #tpu.memory_space<vmem>>, %arg8: memref<128x128xbf16, #tpu.memory_space<vmem>>) attributes {dimension_semantics = [#tpu.dimension_semantics<parallel>, #tpu.dimension_semantics<arbitrary>], iteration_bounds = array<i64: 2, 1>, scalar_prefetch = 0 : i64, scratch_operands = 1 : i64, tpu.core_type = #tpu.core_type<tc>, window_params = [{transform_indices = @transform_0, window_bounds = array<i64: 128, 1024>}, {pipeline_mode = #tpu.pipeline_mode<synchronous>, transform_indices = @transform_1, window_bounds = array<i64: 1024, 128>}, {pipeline_mode = #tpu.pipeline_mode<synchronous>, transform_indices = @transform_2, window_bounds = array<i64: 1, 128>}, {pipeline_mode = #tpu.pipeline_mode<synchronous>, transform_indices = @transform_3, window_bounds = array<i64: 1024, 128>}, {transform_indices = @transform_4, window_bounds = array<i64: 1, 1024>}, {transform_indices = @transform_5, window_bounds = array<i64: 128, 1024>}]} {
    %c0_i32 = arith.constant 0 : i32
    %0 = arith.cmpi eq, %arg1, %c0_i32 : i32
    %1 = arith.extui %0 : i1 to i32
    %c0_i32_0 = arith.constant 0 : i32
    %2 = arith.cmpi ne, %1, %c0_i32_0 : i32
    scf.if %2 {
      %c0_8 = arith.constant 0 : index
      %c0_9 = arith.constant 0 : index
      %19 = vector.load %arg2[%c0_8, %c0_9] : memref<128x1024xbf16, #tpu.memory_space<vmem>>, vector<128x1024xbf16>
      %c0_10 = arith.constant 0 : index
      %c0_11 = arith.constant 0 : index
      %20 = vector.load %arg3[%c0_10, %c0_11] : memref<1024x128xbf16, #tpu.memory_space<vmem>>, vector<1024x128xbf16>
      %cst_12 = arith.constant dense<0.000000e+00> : vector<128x128xf32>
      %21 = tpu.matmul %19, %20, %cst_12 {dimension_numbers = #tpu.dot_dimension_numbers<[1], [0], [0], [1], [0, 0, 1, 1], [], []>} : vector<128x1024xbf16>, vector<1024x128xbf16>, vector<128x128xf32> -> vector<128x128xf32>
      %c0_13 = arith.constant 0 : index
      %c0_14 = arith.constant 0 : index
      %22 = vector.load %arg4[%c0_13, %c0_14] : memref<1x128xf32, #tpu.memory_space<vmem>>, vector<1x128xf32>
      %23 = vector.broadcast %22 : vector<1x128xf32> to vector<128x128xf32>
      %24 = arith.addf %21, %23 : vector<128x128xf32>
      %cst_15 = arith.constant 0.000000e+00 : f32
      %25 = vector.broadcast %cst_15 : f32 to vector<128x128xf32>
      %26 = arith.maximumf %24, %25 : vector<128x128xf32>
      %27 = arith.truncf %26 : vector<128x128xf32> to vector<128x128xbf16>
      %c0_16 = arith.constant 0 : index
      %c0_17 = arith.constant 0 : index
      %28 = vector.load %arg8[%c0_16, %c0_17] : memref<128x128xbf16, #tpu.memory_space<vmem>>, vector<128x128xbf16>
      tpu.vector_store %arg8[%c0_16, %c0_17], %27 {strides = array<i32>} : memref<128x128xbf16, #tpu.memory_space<vmem>>, vector<128x128xbf16>,
    } else {
    }
    %c1024_i32 = arith.constant 1024 : i32
    %3 = arith.muli %arg1, %c1024_i32 : i32
    %4 = tpu.assume_multiple %3, 1024 : i32
    %5 = arith.index_cast %4 : i32 to index
    %c0 = arith.constant 0 : index
    %6 = vector.load %arg5[%5, %c0] : memref<1024x128xbf16, #tpu.memory_space<vmem>>, vector<1024x128xbf16>
    %c0_1 = arith.constant 0 : index
    %c0_2 = arith.constant 0 : index
    %7 = vector.load %arg8[%c0_1, %c0_2] : memref<128x128xbf16, #tpu.memory_space<vmem>>, vector<128x128xbf16>
    %cst = arith.constant dense<0.000000e+00> : vector<128x1024xf32>
    %8 = tpu.matmul %7, %6, %cst {dimension_numbers = #tpu.dot_dimension_numbers<[1], [1], [0], [0], [0, 0, 1, 0], [], []>} : vector<128x128xbf16>, vector<1024x128xbf16>, vector<128x1024xf32> -> vector<128x1024xf32>
    %c0_3 = arith.constant 0 : index
    %c0_4 = arith.constant 0 : index
    %9 = vector.load %arg6[%c0_3, %c0_4] : memref<1x1024xf32, #tpu.memory_space<vmem>>, vector<1x1024xf32>
    %10 = vector.broadcast %9 : vector<1x1024xf32> to vector<128x1024xf32>
    %11 = arith.addf %8, %10 : vector<128x1024xf32>
    %12 = arith.negf %11 : vector<128x1024xf32>
    %13 = math.exp %12 : vector<128x1024xf32>
    %cst_5 = arith.constant 1.000000e+00 : f32
    %14 = vector.broadcast %cst_5 : f32 to vector<128x1024xf32>
    %15 = arith.addf %14, %13 : vector<128x1024xf32>
    %16 = arith.divf %14, %15 : vector<128x1024xf32>
    %17 = arith.truncf %16 : vector<128x1024xf32> to vector<128x1024xbf16>
    %c0_6 = arith.constant 0 : index
    %c0_7 = arith.constant 0 : index
    %18 = vector.load %arg7[%c0_6, %c0_7] : memref<128x1024xbf16, #tpu.memory_space<vmem>>, vector<128x1024xbf16>
    tpu.vector_store %arg7[%c0_6, %c0_7], %17 {strides = array<i32>} : memref<128x1024xbf16, #tpu.memory_space<vmem>>, vector<128x1024xbf16>,
    return
  }
  func.func @transform_0(%arg0: i32, %arg1: i32) -> (i32, i32) {
    %c0_i32 = arith.constant 0 : i32
    %c0_i32_0 = arith.constant 0 : i32
    return %arg0, %c0_i32 : i32, i32
  }
  func.func @transform_1(%arg0: i32, %arg1: i32) -> (i32, i32) {
    %c0_i32 = arith.constant 0 : i32
    %c0_i32_0 = arith.constant 0 : i32
    %c0_i32_1 = arith.constant 0 : i32
    return %c0_i32, %c0_i32_0 : i32, i32
  }
  func.func @transform_2(%arg0: i32, %arg1: i32) -> (i32, i32) {
    %c0_i32 = arith.constant 0 : i32
    %c0_i32_0 = arith.constant 0 : i32
    %c0_i32_1 = arith.constant 0 : i32
    return %c0_i32, %c0_i32_0 : i32, i32
  }
  func.func @transform_3(%arg0: i32, %arg1: i32) -> (i32, i32) {
    %c0_i32 = arith.constant 0 : i32
    %c0_i32_0 = arith.constant 0 : i32
    %c0_i32_1 = arith.constant 0 : i32
    return %c0_i32, %c0_i32_0 : i32, i32
  }
  func.func @transform_4(%arg0: i32, %arg1: i32) -> (i32, i32) {
    %c0_i32 = arith.constant 0 : i32
    %c0_i32_0 = arith.constant 0 : i32
    return %c0_i32, %arg1 : i32, i32
  }
  func.func @transform_5(%arg0: i32, %arg1: i32) -> (i32, i32) {
    %c0_i32 = arith.constant 0 : i32
    return %arg0, %arg1 : i32, i32
  }
}

</mosaic_0001>

<bundles_post_ra>
// kernel: recsys_forward.1
= control target key start
LH: loop header
LB: loop body
LE: loop exit
PB: predicated region body
PF: predicated region fallthrough
CT: control target
= control target key end

     0   :  { %s5504_s18 = smov 0   ;;  %s5506_s19 = smov 0   ;;  %s6700_s0 = inlined_call_operand.vmem [shape: bf16[256,1024], index: 0, kind: input, shape index: {}]   ;;  %s6701_s1 = inlined_call_operand.vmem [shape: bf16[1024,128], index: 1, kind: input, shape index: {}]   ;;  %s6702_s2 = inlined_call_operand.vmem [shape: f32[1,128], index: 2, kind: input, shape index: {}]   ;;  %s6703_s3 = inlined_call_operand.vmem [shape: bf16[1024,128], index: 3, kind: input, shape index: {}]   ;;  %s6704_s4 = inlined_call_operand.vmem [shape: f32[1,1024], index: 4, kind: input, shape index: {}]   ;;  %s6705_s5 = inlined_call_operand.vmem [shape: bf16[256,1024], index: 5, kind: output, shape index: {}]  }
   0x1   :  { %s5508_s20 = smov 0  }
   0x2 LB: > { %s27_s21 = sadd.s32 1, %s5468_s19  ;;  %p3941_p0 = scmp.ge.s32.totalorder %s5472_s20, 1  ;;  %s5472_s20 = sphi %s5508_s20, %s15_s20   ;;  %s5468_s19 = sphi %s5506_s19, %s6743_s19   ;;  %s5464_s18 = sphi %s5504_s18, %s6742_s18  }
   0x3   : > { %p29_p1 = scmp.ge.s32.totalorder %s27_s21, 2  ;;  %p213_p2 = scmp.lt.s32.totalorder %s5472_s20, 3 }
   0x5   : > { %s6745_s21 = smov (%p29_p1, %s27_s21), 0  ;;  %p214_p3 = pnand %p3941_p0, %p213_p2 }
   0x7   : > { %217 = sbr.rel (%p214_p3) target bundleno = 827 (0x33b), region = 40 }
   0xe   : > { %v4809_v0 = vld [vmem:[%s6701_s1 + $0x40] sm:$0xff]   ;;  %v4813_v4 = vld [vmem:[%s6701_s1 + $0x48] sm:$0xff]   ;;  %v4817_v8 = vld [vmem:[%s6701_s1 + $0x50] sm:$0xff]   ;;  %s3942_s8 = sshll.u32 %s5464_s18, 4 }
   0xf   : > { %v4810_v1 = vld [vmem:[%s6701_s1 + $0xc0] sm:$0xff]   ;;  %4401 = vmatprep.subr.bf16.mxu0 %v4809_v0  ;;  %v4814_v5 = vld [vmem:[%s6701_s1 + $0xc8] sm:$0xff]   ;;  %v4818_v9 = vld [vmem:[%s6701_s1 + $0xd0] sm:$0xff]   ;;  %p252_p4 = scmp.lt.s32.totalorder %s3942_s8, 31 }
  0x10   : > { %v4811_v2 = vld [vmem:[%s6701_s1] sm:$0xff]   ;;  %4465 = vmatprep.subr.bf16.mxu1 %v4810_v1  ;;  %v4815_v6 = vld [vmem:[%s6701_s1 + $0x8] sm:$0xff]   ;;  %v4819_v10 = vld [vmem:[%s6701_s1 + $0x10] sm:$0xff]  }
  0x11   : > { %v4812_v3 = vld [vmem:[%s6701_s1 + $0x80] sm:$0xff]   ;;  %4402 = vmatpush3.bf16.msra.mxu0 %v4811_v2  ;;  %v4816_v7 = vld [vmem:[%s6701_s1 + $0x88] sm:$0xff]   ;;  %v4820_v11 = vld [vmem:[%s6701_s1 + $0x90] sm:$0xff]   ;;  %s6747_s8 = smov (!%p252_p4, %s3942_s8), 31 }
  0x12   : > { %4466 = vmatpush3.bf16.msra.mxu1 %v4812_v3  ;;  %4403 = vmatprep.subr.bf16.mxu0 %v4813_v4  ;;  %v4821_v12 = vld [vmem:[%s6701_s1 + $0x58] sm:$0xff]   ;;  %v4825_v16 = vld [vmem:[%s6701_s1 + $0x60] sm:$0xff]   ;;  %v4829_v20 = vld [vmem:[%s6701_s1 + $0x68] sm:$0xff]   ;;  %s4335_s10 = sshll.u32 %s6747_s8, 5 }
  0x13   : > { %4467 = vmatprep.subr.bf16.mxu1 %v4814_v5  ;;  %v4822_v13 = vld [vmem:[%s6701_s1 + $0xd8] sm:$0xff]   ;;  %v4826_v17 = vld [vmem:[%s6701_s1 + $0xe0] sm:$0xff]   ;;  %v4830_v21 = vld [vmem:[%s6701_s1 + $0xe8] sm:$0xff]   ;;  %s5623_s22 = scalar_lea.vmem %s6700_s0, %s4335_s10  ;;  %s6176_s29 = scalar_lea.vmem %s6705_s5, %s4335_s10 }
  0x14   : > { %v4823_v14 = vld [vmem:[%s6701_s1 + $0x18] sm:$0xff]   ;;  %v4827_v18 = vld [vmem:[%s6701_s1 + $0x20] sm:$0xff]   ;;  %v4831_v22 = vld [vmem:[%s6701_s1 + $0x28] sm:$0xff]  }
  0x15   : > { %4404 = vmatpush3.bf16.msra.mxu0 %v4815_v6  ;;  %v4824_v15 = vld [vmem:[%s6701_s1 + $0x98] sm:$0xff]   ;;  %v4828_v19 = vld [vmem:[%s6701_s1 + $0xa0] sm:$0xff]   ;;  %v4832_v23 = vld [vmem:[%s6701_s1 + $0xa8] sm:$0xff]  }
  0x16   : > { %4468 = vmatpush3.bf16.msra.mxu1 %v4816_v7  ;;  %4405 = vmatprep.subr.bf16.mxu0 %v4817_v8  ;;  %v4833_v24 = vld [vmem:[%s6701_s1 + $0x70] sm:$0xff]   ;;  %v4837_v28 = vld [vmem:[%s6701_s1 + $0x78] sm:$0xff]   ;;  %v280_v32 = vld [vmem:[%s5623_s22] sm:$0xff] }
  0x17   : > { %4469 = vmatprep.subr.bf16.mxu1 %v4818_v9  ;;  %v4834_v25 = vld [vmem:[%s6701_s1 + $0xf0] sm:$0xff]   ;;  %v4838_v29 = vld [vmem:[%s6701_s1 + $0xf8] sm:$0xff]   ;;  %v284_v33 = vld [vmem:[%s5623_s22 + $0x20] sm:$0xff] }
  0x18   : > { %v4835_v26 = vld [vmem:[%s6701_s1 + $0x30] sm:$0xff]   ;;  %v4839_v30 = vld [vmem:[%s6701_s1 + $0x38] sm:$0xff]   ;;  %v281_v34 = vld [vmem:[%s5623_s22 + $0x8] sm:$0xff]  ;;  %v3949_v35 = vcombine.low %v280_v32, %v284_v33  ;;  %v3950_v36 = vcombine.high %v280_v32, %v284_v33 }
  0x19   : > { %4406 = vmatpush3.bf16.msra.mxu0 %v4819_v10  ;;  %v4836_v27 = vld [vmem:[%s6701_s1 + $0xb0] sm:$0xff]   ;;  %v4840_v31 = vld [vmem:[%s6701_s1 + $0xb8] sm:$0xff]   ;;  %v285_v37 = vld [vmem:[%s5623_s22 + $0x28] sm:$0xff] }
  0x1a   : > { %4470 = vmatpush3.bf16.msra.mxu1 %v4820_v11  ;;  %4407 = vmatprep.subr.bf16.mxu0 %v4821_v12  ;;  %v3951_v38 = vcombine.low %v281_v34, %v285_v37  ;;  %v3952_v39 = vcombine.high %v281_v34, %v285_v37  ;;  %v4841_v40 = vld [vmem:[%s6701_s1 + $0x140] sm:$0xff]   ;;  %v289_v47 = vld [vmem:[%s5623_s22 + $0x48] sm:$0xff]  ;;  %v4849_v62 = vld [vmem:[%s6701_s1 + $0x150] sm:$0xff]  }
  0x1b   : > { %4471 = vmatprep.subr.bf16.mxu1 %v4822_v13  ;;  %1215 = vmatprep.mubr.bf16.mxu0 %v3950_v36  ;;  %v4842_v41 = vld [vmem:[%s6701_s1 + $0x100] sm:$0xff]   ;;  %v293_v48 = vld [vmem:[%s5623_s22 + $0x68] sm:$0xff]  ;;  %v4850_v63 = vld [vmem:[%s6701_s1 + $0x110] sm:$0xff]  }
  0x1c   : > { %1312 = vmatprep.mubr.bf16.mxu1 %v3952_v39  ;;  %v4843_v42 = vld [vmem:[%s6701_s1 + $0x1c0] sm:$0xff]   ;;  %v3960_v49 = vcombine.high %v289_v47, %v293_v48  ;;  %v4845_v50 = vld [vmem:[%s6701_s1 + $0x148] sm:$0xff]   ;;  %v3959_v53 = vcombine.low %v289_v47, %v293_v48  ;;  %v4851_v0 = vld [vmem:[%s6701_s1 + $0x1d0] sm:$0xff]  }
  0x1d   : > { %4408 = vmatpush3.bf16.msra.mxu0 %v4823_v14  ;;  %v4844_v43 = vld [vmem:[%s6701_s1 + $0x180] sm:$0xff]   ;;  %v4846_v52 = vld [vmem:[%s6701_s1 + $0x108] sm:$0xff]   ;;  %v4852_v1 = vld [vmem:[%s6701_s1 + $0x190] sm:$0xff]  }
  0x1e   : > { %4472 = vmatpush3.bf16.msra.mxu1 %v4824_v15  ;;  %4409 = vmatprep.subr.bf16.mxu0 %v4825_v16  ;;  %v288_v44 = vld [vmem:[%s5623_s22 + $0x40] sm:$0xff]  ;;  %v4847_v54 = vld [vmem:[%s6701_s1 + $0x1c8] sm:$0xff]   ;;  %v4853_v10 = vld [vmem:[%s6701_s1 + $0x158] sm:$0xff]  }
  0x1f   : > { %4473 = vmatprep.subr.bf16.mxu1 %v4826_v17  ;;  %v292_v45 = vld [vmem:[%s5623_s22 + $0x60] sm:$0xff]  ;;  %v4848_v55 = vld [vmem:[%s6701_s1 + $0x188] sm:$0xff]   ;;  %v4854_v11 = vld [vmem:[%s6701_s1 + $0x118] sm:$0xff]  }
  0x20   : > { %v3958_v46 = vcombine.high %v288_v44, %v292_v45  ;;  %v3957_v51 = vcombine.low %v288_v44, %v292_v45  ;;  %v296_v56 = vld [vmem:[%s5623_s22 + $0x80] sm:$0xff]  ;;  %v297_v58 = vld [vmem:[%s5623_s22 + $0x88] sm:$0xff]  ;;  %v4855_v12 = vld [vmem:[%s6701_s1 + $0x1d8] sm:$0xff]  }
  0x21   : > { %4410 = vmatpush3.bf16.msra.mxu0 %v4827_v18  ;;  %v300_v57 = vld [vmem:[%s5623_s22 + $0xa0] sm:$0xff]  ;;  %v301_v59 = vld [vmem:[%s5623_s22 + $0xa8] sm:$0xff]  ;;  %v4856_v13 = vld [vmem:[%s6701_s1 + $0x198] sm:$0xff]  }
  0x22   : > { %4474 = vmatpush3.bf16.msra.mxu1 %v4828_v19  ;;  %4411 = vmatprep.subr.bf16.mxu0 %v4829_v20  ;;  %v3966_v60 = vcombine.high %v296_v56, %v300_v57  ;;  %v3968_v61 = vcombine.high %v297_v58, %v301_v59  ;;  %v3965_v2 = vcombine.low %v296_v56, %v300_v57  ;;  %v304_v3 = vld [vmem:[%s5623_s22 + $0xc0] sm:$0xff]  ;;  %v305_v5 = vld [vmem:[%s5623_s22 + $0xc8] sm:$0xff]  ;;  %v4866_v39 = vld [vmem:[%s6701_s1 + $0x130] sm:$0xff]  }
  0x23   : > { %4475 = vmatprep.subr.bf16.mxu1 %v4830_v21  ;;  %v308_v4 = vld [vmem:[%s5623_s22 + $0xe0] sm:$0xff]  ;;  %v3967_v6 = vcombine.low %v297_v58, %v301_v59  ;;  %v309_v8 = vld [vmem:[%s5623_s22 + $0xe8] sm:$0xff]  ;;  %v4870_v48 = vld [vmem:[%s6701_s1 + $0x138] sm:$0xff]  }
  0x24   : > { %v3974_v7 = vcombine.high %v304_v3, %v308_v4  ;;  %v3976_v9 = vcombine.high %v305_v5, %v309_v8  ;;  %v312_v14 = vld [vmem:[%s5623_s22 + $0x100] sm:$0xff]  ;;  %v313_v16 = vld [vmem:[%s5623_s22 + $0x108] sm:$0xff]  ;;  %v3973_v19 = vcombine.low %v304_v3, %v308_v4  ;;  %v3975_v21 = vcombine.low %v305_v5, %v309_v8  ;;  %v291_v8 = vld [vmem:[%s5623_s22 + $0x58] sm:$0xff] }
  0x25   : > { %4412 = vmatpush3.bf16.msra.mxu0 %v4831_v22  ;;  %v316_v15 = vld [vmem:[%s5623_s22 + $0x120] sm:$0xff]  ;;  %v317_v17 = vld [vmem:[%s5623_s22 + $0x128] sm:$0xff] }
  0x26   : > { %4476 = vmatpush3.bf16.msra.mxu1 %v4832_v23  ;;  %4413 = vmatprep.subr.bf16.mxu0 %v4833_v24  ;;  %v4857_v18 = vld [vmem:[%s6701_s1 + $0x160] sm:$0xff]   ;;  %v3982_v22 = vcombine.high %v312_v14, %v316_v15  ;;  %v3984_v24 = vcombine.high %v313_v16, %v317_v17  ;;  %v4863_v32 = vld [vmem:[%s6701_s1 + $0x1e8] sm:$0xff]   ;;  %v3981_v34 = vcombine.low %v312_v14, %v316_v15  ;;  %v298_v14 = vld [vmem:[%s5623_s22 + $0x90] sm:$0xff] }
  0x27   : > { %4477 = vmatprep.subr.bf16.mxu1 %v4834_v25  ;;  %v4858_v20 = vld [vmem:[%s6701_s1 + $0x120] sm:$0xff]   ;;  %v4864_v33 = vld [vmem:[%s6701_s1 + $0x1a8] sm:$0xff]   ;;  %v302_v15 = vld [vmem:[%s5623_s22 + $0xb0] sm:$0xff] }
  0x28   : > { %v4859_v23 = vld [vmem:[%s6701_s1 + $0x1e0] sm:$0xff]   ;;  %v329_v44 = vld [vmem:[%s5623_s22 + $0x188] sm:$0xff] }
  0x29   : > { %4414 = vmatpush3.bf16.msra.mxu0 %v4835_v26  ;;  %v4860_v25 = vld [vmem:[%s6701_s1 + $0x1a0] sm:$0xff]   ;;  %v333_v45 = vld [vmem:[%s5623_s22 + $0x1a8] sm:$0xff] }
  0x2a   : > { %4478 = vmatpush3.bf16.msra.mxu1 %v4836_v27  ;;  %4415 = vmatprep.subr.bf16.mxu0 %v4837_v28  ;;  %v320_v26 = vld [vmem:[%s5623_s22 + $0x140] sm:$0xff]  ;;  %v4861_v28 = vld [vmem:[%s6701_s1 + $0x168] sm:$0xff]   ;;  %v3999_v59 = vcombine.low %v329_v44, %v333_v45 }
  0x2b   : > { %4479 = vmatprep.subr.bf16.mxu1 %v4838_v29  ;;  %v324_v27 = vld [vmem:[%s5623_s22 + $0x160] sm:$0xff]  ;;  %v321_v29 = vld [vmem:[%s5623_s22 + $0x148] sm:$0xff] }
  0x2c   : > { %v3990_v36 = vcombine.high %v320_v26, %v324_v27  ;;  %v3989_v47 = vcombine.low %v320_v26, %v324_v27  ;;  %v337_v56 = vld [vmem:[%s5623_s22 + $0x1c8] sm:$0xff]  ;;  %v3969_v26 = vcombine.low %v298_v14, %v302_v15 }
  0x2d   : > { %4416 = vmatpush3.bf16.msra.mxu0 %v4839_v30  ;;  %v325_v30 = vld [vmem:[%s5623_s22 + $0x168] sm:$0xff] }
  0x2e   : > { %4480 = vmatpush3.bf16.msra.mxu1 %v4840_v31  ;;  %4529 = vmatprep.subr.bf16.mxu0 %v4841_v40  ;;  %v4862_v31 = vld [vmem:[%s6701_s1 + $0x128] sm:$0xff]   ;;  %v3992_v37 = vcombine.high %v321_v29, %v325_v30  ;;  %v4867_v40 = vld [vmem:[%s6701_s1 + $0x1f0] sm:$0xff]  }
  0x2f   : > { %4593 = vmatprep.subr.bf16.mxu1 %v4843_v42  ;;  %v332_v42 = vld [vmem:[%s5623_s22 + $0x1a0] sm:$0xff]  ;;  %v341_v57 = vld [vmem:[%s5623_s22 + $0x1e8] sm:$0xff] }
  0x30   : > { %1216 = vmatmul.mubr.bf16.vlgmr.msra.gmra.mrb[0].mxu0 %v3949_v35  ;;  %v3983_v35 = vcombine.low %v313_v16, %v317_v17  ;;  %v4007_v3 = vcombine.low %v337_v56, %v341_v57  ;;  %v299_v16 = vld [vmem:[%s5623_s22 + $0x98] sm:$0xff] }
  0x31   : > { %1313 = vmatmul.mubr.bf16.vlgmr.msra.gmra.mrb[0].mxu1 %v3951_v38  ;;  %4530 = vmatpush3.bf16.msra.mxu0 %v4842_v41  ;;  %v4865_v38 = vld [vmem:[%s6701_s1 + $0x170] sm:$0xff]   ;;  %v328_v41 = vld [vmem:[%s5623_s22 + $0x180] sm:$0xff]  ;;  %v303_v17 = vld [vmem:[%s5623_s22 + $0xb8] sm:$0xff] }
  0x32   : > { %4594 = vmatpush3.bf16.msra.mxu1 %v4844_v43  ;;  %1223 = vmatprep.mubr.bf16.mxu0 %v3958_v46  ;;  %v4868_v43 = vld [vmem:[%s6701_s1 + $0x1b0] sm:$0xff]   ;;  %v4869_v46 = vld [vmem:[%s6701_s1 + $0x178] sm:$0xff]   ;;  %v3997_v58 = vcombine.low %v328_v41, %v332_v42  ;;  %v3971_v27 = vcombine.low %v299_v16, %v303_v17 }
  0x33   : > { %1320 = vmatprep.mubr.bf16.mxu1 %v3960_v49  ;;  %4531 = vmatprep.subr.bf16.mxu0 %v4845_v50  ;;  %v3991_v49 = vcombine.low %v321_v29, %v325_v30  ;;  %v3998_v50 = vcombine.high %v328_v41, %v332_v42  ;;  %v314_v30 = vld [vmem:[%s5623_s22 + $0x110] sm:$0xff]  ;;  %v327_v41 = vld [vmem:[%s5623_s22 + $0x178] sm:$0xff] }
  0x34   : > { %4595 = vmatprep.subr.bf16.mxu1 %v4847_v54  ;;  %v336_v54 = vld [vmem:[%s5623_s22 + $0x1c0] sm:$0xff] }
  0x35   : > { %4532 = vmatpush3.bf16.msra.mxu0 %v4846_v52  ;;  %v4000_v52 = vcombine.high %v329_v44, %v333_v45 }
  0x36   : > { %4596 = vmatpush3.bf16.msra.mxu1 %v4848_v55  ;;  %4533 = vmatprep.subr.bf16.mxu0 %v4849_v62  ;;  %v340_v55 = vld [vmem:[%s5623_s22 + $0x1e0] sm:$0xff]  ;;  %v282_v62 = vld [vmem:[%s5623_s22 + $0x10] sm:$0xff] }
  0x37   : > { %4597 = vmatprep.subr.bf16.mxu1 %v4851_v0  ;;  %v283_v0 = vld [vmem:[%s5623_s22 + $0x18] sm:$0xff] }
  0x38   : > { %1224 = vmatmul.mubr.bf16.gmra.mrb[4].mxu0 %v3957_v51  ;;  %v4871_v51 = vld [vmem:[%s6701_s1 + $0x1f8] sm:$0xff]  }
  0x39   : > { %1321 = vmatmul.mubr.bf16.gmra.mrb[4].mxu1 %v3959_v53  ;;  %1231 = vmatprep.mubr.bf16.mxu0 %v3966_v60  ;;  %v4872_v53 = vld [vmem:[%s6701_s1 + $0x1b8] sm:$0xff]   ;;  %v4006_v60 = vcombine.high %v336_v54, %v340_v55 }
  0x3a   : > { %1328 = vmatprep.mubr.bf16.mxu1 %v3968_v61  ;;  %4534 = vmatpush3.bf16.msra.mxu0 %v4850_v63  ;;  %v4008_v61 = vcombine.high %v337_v56, %v341_v57  ;;  %v286_v63 = vld [vmem:[%s5623_s22 + $0x30] sm:$0xff] }
  0x3b   : > { %4598 = vmatpush3.bf16.msra.mxu1 %v4852_v1  ;;  %4535 = vmatprep.subr.bf16.mxu0 %v4853_v10  ;;  %v287_v1 = vld [vmem:[%s5623_s22 + $0x38] sm:$0xff]  ;;  %v3954_v4 = vcombine.high %v282_v62, %v286_v63  ;;  %v3953_v10 = vcombine.low %v282_v62, %v286_v63  ;;  %v4879_v62 = vld [vmem:[%s6703_s3 + $0x8] sm:$0xff]  }
  0x3c   : > { %4599 = vmatprep.subr.bf16.mxu1 %v4855_v12  ;;  %v3956_v5 = vcombine.high %v283_v0, %v287_v1  ;;  %v4880_v63 = vld [vmem:[%s6703_s3 + $0x88] sm:$0xff]  }
  0x3e   : > { %4536 = vmatpush3.bf16.msra.mxu0 %v4854_v11  ;;  %v3955_v11 = vcombine.low %v283_v0, %v287_v1  ;;  %v339_v0 = vld [vmem:[%s5623_s22 + $0x1d8] sm:$0xff] }
  0x3f   : > { %4600 = vmatpush3.bf16.msra.mxu1 %v4856_v13  ;;  %4537 = vmatprep.subr.bf16.mxu0 %v4857_v18  ;;  %v343_v1 = vld [vmem:[%s5623_s22 + $0x1f8] sm:$0xff] }
  0x40   : > { %1232 = vmatmul.mubr.bf16.gmra.mrb[8].mxu0 %v3965_v2  ;;  %4601 = vmatprep.subr.bf16.mxu1 %v4859_v23  ;;  %v4005_v2 = vcombine.low %v336_v54, %v340_v55  ;;  %v310_v23 = vld [vmem:[%s5623_s22 + $0xf0] sm:$0xff] }
  0x41   : > { %1329 = vmatmul.mubr.bf16.gmra.mrb[8].mxu1 %v3967_v6  ;;  %1239 = vmatprep.mubr.bf16.mxu0 %v3974_v7  ;;  %v290_v6 = vld [vmem:[%s5623_s22 + $0x50] sm:$0xff] }
  0x42   : > { %1336 = vmatprep.mubr.bf16.mxu1 %v3976_v9  ;;  %4538 = vmatpush3.bf16.msra.mxu0 %v4858_v20  ;;  %v294_v7 = vld [vmem:[%s5623_s22 + $0x70] sm:$0xff]  ;;  %v295_v9 = vld [vmem:[%s5623_s22 + $0x78] sm:$0xff]  ;;  %v3970_v20 = vcombine.high %v298_v14, %v302_v15 }
  0x43   : > { %4602 = vmatpush3.bf16.msra.mxu1 %v4860_v25  ;;  %4539 = vmatprep.subr.bf16.mxu0 %v4861_v28  ;;  %v3962_v12 = vcombine.high %v290_v6, %v294_v7  ;;  %v3964_v13 = vcombine.high %v291_v8, %v295_v9  ;;  %v3961_v18 = vcombine.low %v290_v6, %v294_v7  ;;  %v311_v25 = vld [vmem:[%s5623_s22 + $0xf8] sm:$0xff]  ;;  %v4881_v6 = vld [vmem:[%s6703_s3 + $0x50] sm:$0xff]  }
  0x44   : > { %4603 = vmatprep.subr.bf16.mxu1 %v4863_v32  ;;  %v315_v32 = vld [vmem:[%s5623_s22 + $0x118] sm:$0xff]  ;;  %v4882_v7 = vld [vmem:[%s6703_s3 + $0xd0] sm:$0xff]  }
  0x45   : > { %v4887_v14 = vld [vmem:[%s6703_s3 + $0x18] sm:$0xff]  }
  0x46   : > { %4540 = vmatpush3.bf16.msra.mxu0 %v4862_v31  ;;  %v318_v31 = vld [vmem:[%s5623_s22 + $0x130] sm:$0xff]  ;;  %v4888_v15 = vld [vmem:[%s6703_s3 + $0x98] sm:$0xff]  }
  0x47   : > { %4604 = vmatpush3.bf16.msra.mxu1 %v4864_v33  ;;  %4541 = vmatprep.subr.bf16.mxu0 %v4865_v38  ;;  %v319_v33 = vld [vmem:[%s5623_s22 + $0x138] sm:$0xff]  ;;  %v322_v38 = vld [vmem:[%s5623_s22 + $0x150] sm:$0xff]  ;;  %v3985_v42 = vcombine.low %v314_v30, %v318_v31 }
  0x48   : > { %1240 = vmatmul.mubr.bf16.gmra.mrb[12].mxu0 %v3973_v19  ;;  %4605 = vmatprep.subr.bf16.mxu1 %v4867_v40  ;;  %v3963_v19 = vcombine.low %v291_v8, %v295_v9  ;;  %v323_v40 = vld [vmem:[%s5623_s22 + $0x158] sm:$0xff]  ;;  %v4883_v8 = vld [vmem:[%s6703_s3 + $0x10] sm:$0xff]  }
  0x49   : > { %1337 = vmatmul.mubr.bf16.gmra.mrb[12].mxu1 %v3975_v21  ;;  %1247 = vmatprep.mubr.bf16.mxu0 %v3982_v22  ;;  %v3972_v21 = vcombine.high %v299_v16, %v303_v17  ;;  %v306_v22 = vld [vmem:[%s5623_s22 + $0xd0] sm:$0xff]  ;;  %v3996_v45 = vcombine.high %v323_v40, %v327_v41  ;;  %v3995_v55 = vcombine.low %v323_v40, %v327_v41  ;;  %v4889_v16 = vld [vmem:[%s6703_s3 + $0x60] sm:$0xff]  }
  0x4a   : > { %1344 = vmatprep.mubr.bf16.mxu1 %v3984_v24  ;;  %4542 = vmatpush3.bf16.msra.mxu0 %v4866_v39  ;;  %v307_v24 = vld [vmem:[%s5623_s22 + $0xd8] sm:$0xff]  ;;  %v3978_v28 = vcombine.high %v306_v22, %v310_v23  ;;  %v326_v39 = vld [vmem:[%s5623_s22 + $0x170] sm:$0xff]  ;;  %v4890_v17 = vld [vmem:[%s6703_s3 + $0xe0] sm:$0xff]  }
  0x4b   : > { %4606 = vmatpush3.bf16.msra.mxu1 %v4868_v43  ;;  %4543 = vmatprep.subr.bf16.mxu0 %v4869_v46  ;;  %v3980_v29 = vcombine.high %v307_v24, %v311_v25  ;;  %v3987_v43 = vcombine.low %v315_v32, %v319_v33  ;;  %v3994_v44 = vcombine.high %v322_v38, %v326_v39  ;;  %v330_v46 = vld [vmem:[%s5623_s22 + $0x190] sm:$0xff] }
  0x4c   : > { %4607 = vmatprep.subr.bf16.mxu1 %v4871_v51  ;;  %v4876_v51 = vld [vmem:[%s6703_s3 + $0x80] sm:$0xff]   ;;  %v3993_v54 = vcombine.low %v322_v38, %v326_v39  ;;  %v4884_v9 = vld [vmem:[%s6703_s3 + $0x90] sm:$0xff]  }
  0x4e   : > { %4544 = vmatpush3.bf16.msra.mxu0 %v4870_v48  ;;  %v4874_v48 = vld [vmem:[%s6703_s3 + $0xc0] sm:$0xff]  }
  0x4f   : > { %4608 = vmatpush3.bf16.msra.mxu1 %v4872_v53  ;;  %v335_v53 = vld [vmem:[%s5623_s22 + $0x1b8] sm:$0xff] }
  0x50   : > { %1248 = vmatmul.mubr.bf16.gmra.mrb[16].mxu0 %v3981_v34  ;;  %v3977_v34 = vcombine.low %v306_v22, %v310_v23  ;;  %4689 = vmatprep.subr.bf16.mxu1 %v4874_v48  ;;  %v4895_v22 = vld [vmem:[%s6703_s3 + $0x28] sm:$0xff]  }
  0x51   : > { %1345 = vmatmul.mubr.bf16.gmra.mrb[16].mxu1 %v3983_v35  ;;  %1255 = vmatprep.mubr.bf16.mxu0 %v3990_v36  ;;  %v3979_v35 = vcombine.low %v307_v24, %v311_v25  ;;  %v3986_v36 = vcombine.high %v314_v30, %v318_v31  ;;  %v4896_v23 = vld [vmem:[%s6703_s3 + $0xa8] sm:$0xff]   ;;  %v4897_v24 = vld [vmem:[%s6703_s3 + $0x70] sm:$0xff]   ;;  %v4903_v30 = vld [vmem:[%s6703_s3 + $0x38] sm:$0xff]  }
  0x52   : > { %1352 = vmatprep.mubr.bf16.mxu1 %v3992_v37  ;;  %v3988_v37 = vcombine.high %v315_v32, %v319_v33  ;;  %v4898_v25 = vld [vmem:[%s6703_s3 + $0xf0] sm:$0xff]   ;;  %v4904_v31 = vld [vmem:[%s6703_s3 + $0xb8] sm:$0xff]   ;;  %v4905_v32 = vld [vmem:[%s6703_s3 + $0x140] sm:$0xff]  }
  0x53   : > { %v4906_v33 = vld [vmem:[%s6703_s3 + $0x1c0] sm:$0xff]  }
  0x58   : > { %1256 = vmatmul.mubr.bf16.gmra.mrb[20].mxu0 %v3989_v47  ;;  %v4873_v47 = vld [vmem:[%s6703_s3 + $0x40] sm:$0xff]  }
  0x59   : > { %1353 = vmatmul.mubr.bf16.gmra.mrb[20].mxu1 %v3991_v49  ;;  %1263 = vmatprep.mubr.bf16.mxu0 %v3998_v50  ;;  %v334_v49 = vld [vmem:[%s5623_s22 + $0x1b0] sm:$0xff]  ;;  %v4875_v50 = vld [vmem:[%s6703_s3] sm:$0xff]  }
  0x5a   : > { %1360 = vmatprep.mubr.bf16.mxu1 %v4000_v52  ;;  %v331_v52 = vld [vmem:[%s5623_s22 + $0x198] sm:$0xff]  ;;  %4657 = vmatprep.subr.bf16.mxu0 %v4873_v47  ;;  %v4002_v56 = vcombine.high %v330_v46, %v334_v49 }
  0x5b   : > { %v4004_v57 = vcombine.high %v331_v52, %v335_v53 }
  0x60   : > { %1264 = vmatmul.mubr.bf16.gmra.mrb[24].mxu0 %v3997_v58  ;;  %v338_v58 = vld [vmem:[%s5623_s22 + $0x1d0] sm:$0xff] }
  0x61   : > { %1361 = vmatmul.mubr.bf16.gmra.mrb[24].mxu1 %v3999_v59  ;;  %1271 = vmatprep.mubr.bf16.mxu0 %v4006_v60  ;;  %v4877_v59 = vld [vmem:[%s6703_s3 + $0x48] sm:$0xff]  }
  0x62   : > { %1368 = vmatprep.mubr.bf16.mxu1 %v4008_v61  ;;  %v4878_v60 = vld [vmem:[%s6703_s3 + $0xc8] sm:$0xff]   ;;  %v342_v61 = vld [vmem:[%s5623_s22 + $0x1f0] sm:$0xff] }
  0x68   : > { %1272 = vmatmul.mubr.bf16.gmra.mrb[28].mxu0 %v4005_v2  ;;  %v4001_v2 = vcombine.low %v330_v46, %v334_v49 }
  0x69   : > { %1369 = vmatmul.mubr.bf16.gmra.mrb[28].mxu1 %v4007_v3  ;;  %1409 = vmatprep.mubr.bf16.mxu0 %v3954_v4  ;;  %v4003_v3 = vcombine.low %v331_v52, %v335_v53  ;;  %v4010_v4 = vcombine.high %v338_v58, %v342_v61 }
  0x6a   : > { %1506 = vmatprep.mubr.bf16.mxu1 %v3956_v5  ;;  %v4012_v5 = vcombine.high %v339_v0, %v343_v1 }
  0x70   : > { %1410 = vmatmul.mubr.bf16.vlgmr.msra.gmra.mrb[32].mxu0 %v3953_v10  ;;  %v4009_v10 = vcombine.low %v338_v58, %v342_v61 }
  0x71   : > { %1507 = vmatmul.mubr.bf16.vlgmr.msra.gmra.mrb[32].mxu1 %v3955_v11  ;;  %1417 = vmatprep.mubr.bf16.mxu0 %v3962_v12  ;;  %v4011_v11 = vcombine.low %v339_v0, %v343_v1  ;;  %v4885_v12 = vld [vmem:[%s6703_s3 + $0x58] sm:$0xff]  }
  0x72   : > { %1514 = vmatprep.mubr.bf16.mxu1 %v3964_v13  ;;  %4658 = vmatpush3.bf16.xpose.msra.mxu0 %v4875_v50  ;;  %v4886_v13 = vld [vmem:[%s6703_s3 + $0xd8] sm:$0xff]  }
  0x73   : > { %4690 = vmatpush3.bf16.xpose.msra.mxu1 %v4876_v51  ;;  %4659 = vmatprep.subr.bf16.mxu0 %v4877_v59 }
  0x74   : > { %4691 = vmatprep.subr.bf16.mxu1 %v4878_v60 }
  0x78   : > { %1418 = vmatmul.mubr.bf16.gmra.mrb[36].mxu0 %v3961_v18  ;;  %v4891_v18 = vld [vmem:[%s6703_s3 + $0x20] sm:$0xff]  }
  0x79   : > { %1515 = vmatmul.mubr.bf16.gmra.mrb[36].mxu1 %v3963_v19  ;;  %1425 = vmatprep.mubr.bf16.mxu0 %v3970_v20  ;;  %v4892_v19 = vld [vmem:[%s6703_s3 + $0xa0] sm:$0xff]   ;;  %v4893_v20 = vld [vmem:[%s6703_s3 + $0x68] sm:$0xff]  }
  0x7a   : > { %1522 = vmatprep.mubr.bf16.mxu1 %v3972_v21  ;;  %4660 = vmatpush3.bf16.xpose.msra.mxu0 %v4879_v62  ;;  %v4894_v21 = vld [vmem:[%s6703_s3 + $0xe8] sm:$0xff]  }
  0x7b   : > { %4692 = vmatpush3.bf16.xpose.msra.mxu1 %v4880_v63  ;;  %4661 = vmatprep.subr.bf16.mxu0 %v4881_v6 }
  0x7c   : > { %4693 = vmatprep.subr.bf16.mxu1 %v4882_v7 }
  0x80   : > { %1426 = vmatmul.mubr.bf16.gmra.mrb[40].mxu0 %v3969_v26  ;;  %v4899_v26 = vld [vmem:[%s6703_s3 + $0x30] sm:$0xff]  }
  0x81   : > { %1523 = vmatmul.mubr.bf16.gmra.mrb[40].mxu1 %v3971_v27  ;;  %1433 = vmatprep.mubr.bf16.mxu0 %v3978_v28  ;;  %v4900_v27 = vld [vmem:[%s6703_s3 + $0xb0] sm:$0xff]   ;;  %v4901_v28 = vld [vmem:[%s6703_s3 + $0x78] sm:$0xff]  }
  0x82   : > { %1530 = vmatprep.mubr.bf16.mxu1 %v3980_v29  ;;  %4662 = vmatpush3.bf16.xpose.msra.mxu0 %v4883_v8  ;;  %v4902_v29 = vld [vmem:[%s6703_s3 + $0xf8] sm:$0xff]  }
  0x83   : > { %4694 = vmatpush3.bf16.xpose.msra.mxu1 %v4884_v9  ;;  %4663 = vmatprep.subr.bf16.mxu0 %v4885_v12 }
  0x84   : > { %4695 = vmatprep.subr.bf16.mxu1 %v4886_v13 }
  0x88   : > { %1434 = vmatmul.mubr.bf16.gmra.mrb[44].mxu0 %v3977_v34 }
  0x89   : > { %1531 = vmatmul.mubr.bf16.gmra.mrb[44].mxu1 %v3979_v35  ;;  %1441 = vmatprep.mubr.bf16.mxu0 %v3986_v36  ;;  %v5896_v36 = vld [vmem:[%s6702_s2] ss:$0 sm:$0xff] }
  0x8a   : > { %1538 = vmatprep.mubr.bf16.mxu1 %v3988_v37  ;;  %4664 = vmatpush3.bf16.xpose.msra.mxu0 %v4887_v14 }
  0x8b   : > { %4696 = vmatpush3.bf16.xpose.msra.mxu1 %v4888_v15  ;;  %4665 = vmatprep.subr.bf16.mxu0 %v4889_v16 }
  0x8c   : > { %4697 = vmatprep.subr.bf16.mxu1 %v4890_v17 }
  0x90   : > { %1442 = vmatmul.mubr.bf16.gmra.mrb[48].mxu0 %v3985_v42 }
  0x91   : > { %1539 = vmatmul.mubr.bf16.gmra.mrb[48].mxu1 %v3987_v43  ;;  %1449 = vmatprep.mubr.bf16.mxu0 %v3994_v44 }
  0x92   : > { %1546 = vmatprep.mubr.bf16.mxu1 %v3996_v45  ;;  %4666 = vmatpush3.bf16.xpose.msra.mxu0 %v4891_v18 }
  0x93   : > { %4698 = vmatpush3.bf16.xpose.msra.mxu1 %v4892_v19  ;;  %4667 = vmatprep.subr.bf16.mxu0 %v4893_v20 }
  0x94   : > { %4699 = vmatprep.subr.bf16.mxu1 %v4894_v21 }
  0x98   : > { %1450 = vmatmul.mubr.bf16.gmra.mrb[52].mxu0 %v3993_v54 }
  0x99   : > { %1547 = vmatmul.mubr.bf16.gmra.mrb[52].mxu1 %v3995_v55  ;;  %1457 = vmatprep.mubr.bf16.mxu0 %v4002_v56 }
  0x9a   : > { %1554 = vmatprep.mubr.bf16.mxu1 %v4004_v57  ;;  %4668 = vmatpush3.bf16.xpose.msra.mxu0 %v4895_v22 }
  0x9b   : > { %4700 = vmatpush3.bf16.xpose.msra.mxu1 %v4896_v23  ;;  %4669 = vmatprep.subr.bf16.mxu0 %v4897_v24 }
  0x9c   : > { %4701 = vmatprep.subr.bf16.mxu1 %v4898_v25 }
  0xa0   : > { %1458 = vmatmul.mubr.bf16.gmra.mrb[56].mxu0 %v4001_v2 }
  0xa1   : > { %1555 = vmatmul.mubr.bf16.gmra.mrb[56].mxu1 %v4003_v3  ;;  %1465 = vmatprep.mubr.bf16.mxu0 %v4010_v4 }
  0xa2   : > { %1562 = vmatprep.mubr.bf16.mxu1 %v4012_v5  ;;  %4670 = vmatpush3.bf16.xpose.msra.mxu0 %v4899_v26 }
  0xa3   : > { %4702 = vmatpush3.bf16.xpose.msra.mxu1 %v4900_v27  ;;  %4671 = vmatprep.subr.bf16.mxu0 %v4901_v28 }
  0xa4   : > { %4703 = vmatprep.subr.bf16.mxu1 %v4902_v29 }
  0xa8   : > { %1466 = vmatmul.mubr.bf16.gmra.mrb[60].mxu0 %v4009_v10 }
  0xa9   : > { %1563 = vmatmul.mubr.bf16.gmra.mrb[60].mxu1 %v4011_v11 }
  0xaa   : > { %4672 = vmatpush3.bf16.xpose.msra.mxu0 %v4903_v30 }
  0xab   : > { %4704 = vmatpush3.bf16.xpose.msra.mxu1 %v4904_v31  ;;  %4721 = vmatprep.subr.bf16.mxu0 %v4905_v32 }
  0xac   : > { %4753 = vmatprep.subr.bf16.mxu1 %v4906_v33 }
 0x103   : > { %v4417_v34 = vpop.f32.mrb[0].mxu0 }
 0x104   : > { %v4481_v35 = vpop.f32.mrb[0].mxu1  ;;  %v4418_v37 = vpop.f32.mrb[1].mxu0 }
 0x105   : > { %v4419_v38 = vadd.f32 %v4418_v37, %v4417_v34  ;;  %v4482_v39 = vpop.f32.mrb[1].mxu1  ;;  %v4420_v40 = vpop.f32.mrb[2].mxu0 }
 0x106   : > { %v4483_v41 = vadd.f32 %v4482_v39, %v4481_v35  ;;  %v4484_v42 = vpop.f32.mrb[2].mxu1  ;;  %v4421_v43 = vpop.f32.mrb[3].mxu0 }
 0x107   : > { %v1218_v44 = vadd.f32 %v4419_v38, %v5896_v36  ;;  %v4422_v45 = vadd.f32 %v4421_v43, %v4420_v40  ;;  %v4485_v46 = vpop.f32.mrb[3].mxu1 }
 0x108   : > { %v4486_v47 = vadd.f32 %v4485_v46, %v4484_v42 }
 0x109   : > { %v5899_v48 = vadd.f32 %v4483_v41, %v1218_v44  ;;  %v1221_v49 = vadd.f32 %v4422_v45, %v5896_v36 }
 0x10b   : > { %v5902_v50 = vadd.f32 %v4486_v47, %v1221_v49  ;;  %v4423_v51 = vpop.f32.mrb[4].mxu0 }
 0x10c   : > { %v4487_v52 = vpop.f32.mrb[4].mxu1  ;;  %v4424_v53 = vpop.f32.mrb[5].mxu0 }
 0x10d   : > { %v4425_v54 = vadd.f32 %v4424_v53, %v4423_v51  ;;  %v4488_v55 = vpop.f32.mrb[5].mxu1  ;;  %v4426_v56 = vpop.f32.mrb[6].mxu0 }
 0x10e   : > { %v4489_v57 = vadd.f32 %v4488_v55, %v4487_v52  ;;  %v4490_v58 = vpop.f32.mrb[6].mxu1  ;;  %v4427_v59 = vpop.f32.mrb[7].mxu0 }
 0x10f   : > { %v1226_v60 = vadd.f32 %v4425_v54, %v5896_v36  ;;  %v4428_v61 = vadd.f32 %v4427_v59, %v4426_v56  ;;  %v4491_v62 = vpop.f32.mrb[7].mxu1 }
 0x110   : > { %v4492_v63 = vadd.f32 %v4491_v62, %v4490_v58 }
 0x111   : > { %v5905_v0 = vadd.f32 %v4489_v57, %v1226_v60  ;;  %v1229_v1 = vadd.f32 %v4428_v61, %v5896_v36 }
 0x113   : > { %v5908_v2 = vadd.f32 %v4492_v63, %v1229_v1  ;;  %v4429_v3 = vpop.f32.mrb[8].mxu0 }
 0x114   : > { %v4493_v4 = vpop.f32.mrb[8].mxu1  ;;  %v4430_v5 = vpop.f32.mrb[9].mxu0 }
 0x115   : > { %v4431_v6 = vadd.f32 %v4430_v5, %v4429_v3  ;;  %v4494_v7 = vpop.f32.mrb[9].mxu1  ;;  %v4432_v8 = vpop.f32.mrb[10].mxu0 }
 0x116   : > { %v4495_v9 = vadd.f32 %v4494_v7, %v4493_v4  ;;  %v4496_v10 = vpop.f32.mrb[10].mxu1  ;;  %v4433_v11 = vpop.f32.mrb[11].mxu0 }
 0x117   : > { %v1234_v12 = vadd.f32 %v4431_v6, %v5896_v36  ;;  %v4434_v13 = vadd.f32 %v4433_v11, %v4432_v8  ;;  %v4497_v14 = vpop.f32.mrb[11].mxu1 }
 0x118   : > { %v4498_v15 = vadd.f32 %v4497_v14, %v4496_v10 }
 0x119   : > { %v5911_v16 = vadd.f32 %v4495_v9, %v1234_v12  ;;  %v1237_v17 = vadd.f32 %v4434_v13, %v5896_v36 }
 0x11b   : > { %v5914_v18 = vadd.f32 %v4498_v15, %v1237_v17  ;;  %v4435_v19 = vpop.f32.mrb[12].mxu0 }
 0x11c   : > { %v4499_v20 = vpop.f32.mrb[12].mxu1  ;;  %v4436_v21 = vpop.f32.mrb[13].mxu0 }
 0x11d   : > { %v4437_v22 = vadd.f32 %v4436_v21, %v4435_v19  ;;  %v4500_v23 = vpop.f32.mrb[13].mxu1  ;;  %v4438_v24 = vpop.f32.mrb[14].mxu0 }
 0x11e   : > { %v4501_v25 = vadd.f32 %v4500_v23, %v4499_v20  ;;  %v4502_v26 = vpop.f32.mrb[14].mxu1  ;;  %v4439_v27 = vpop.f32.mrb[15].mxu0 }
 0x11f   : > { %v1242_v28 = vadd.f32 %v4437_v22, %v5896_v36  ;;  %v4440_v29 = vadd.f32 %v4439_v27, %v4438_v24  ;;  %v4503_v30 = vpop.f32.mrb[15].mxu1 }
 0x120   : > { %v4504_v31 = vadd.f32 %v4503_v30, %v4502_v26 }
 0x121   : > { %v5917_v32 = vadd.f32 %v4501_v25, %v1242_v28  ;;  %v1245_v33 = vadd.f32 %v4440_v29, %v5896_v36 }
 0x123   : > { %v5920_v34 = vadd.f32 %v4504_v31, %v1245_v33  ;;  %v4441_v35 = vpop.f32.mrb[16].mxu0 }
 0x124   : > { %v4505_v37 = vpop.f32.mrb[16].mxu1  ;;  %v4442_v38 = vpop.f32.mrb[17].mxu0 }
 0x125   : > { %v4443_v39 = vadd.f32 %v4442_v38, %v4441_v35  ;;  %v4506_v40 = vpop.f32.mrb[17].mxu1  ;;  %v4444_v41 = vpop.f32.mrb[18].mxu0 }
 0x126   : > { %v4507_v42 = vadd.f32 %v4506_v40, %v4505_v37  ;;  %v4508_v43 = vpop.f32.mrb[18].mxu1  ;;  %v4445_v44 = vpop.f32.mrb[19].mxu0 }
 0x127   : > { %v1250_v45 = vadd.f32 %v4443_v39, %v5896_v36  ;;  %v4446_v46 = vadd.f32 %v4445_v44, %v4444_v41  ;;  %v4509_v47 = vpop.f32.mrb[19].mxu1 }
 0x128   : > { %v4510_v49 = vadd.f32 %v4509_v47, %v4508_v43 }
 0x129   : > { %v5923_v51 = vadd.f32 %v4507_v42, %v1250_v45  ;;  %v1253_v52 = vadd.f32 %v4446_v46, %v5896_v36 }
 0x12b   : > { %v5926_v53 = vadd.f32 %v4510_v49, %v1253_v52  ;;  %v4447_v54 = vpop.f32.mrb[20].mxu0 }
 0x12c   : > { %v4511_v55 = vpop.f32.mrb[20].mxu1  ;;  %v4448_v56 = vpop.f32.mrb[21].mxu0 }
 0x12d   : > { %v4449_v57 = vadd.f32 %v4448_v56, %v4447_v54  ;;  %v4512_v58 = vpop.f32.mrb[21].mxu1  ;;  %v4450_v59 = vpop.f32.mrb[22].mxu0 }
 0x12e   : > { %v4513_v60 = vadd.f32 %v4512_v58, %v4511_v55  ;;  %v4514_v61 = vpop.f32.mrb[22].mxu1  ;;  %v4451_v62 = vpop.f32.mrb[23].mxu0 }
 0x12f   : > { %v1258_v63 = vadd.f32 %v4449_v57, %v5896_v36  ;;  %v4452_v1 = vadd.f32 %v4451_v62, %v4450_v59  ;;  %v4515_v3 = vpop.f32.mrb[23].mxu1 }
 0x130   : > { %v4516_v4 = vadd.f32 %v4515_v3, %v4514_v61 }
 0x131   : > { %v5929_v5 = vadd.f32 %v4513_v60, %v1258_v63  ;;  %v1261_v6 = vadd.f32 %v4452_v1, %v5896_v36 }
 0x133   : > { %v5932_v7 = vadd.f32 %v4516_v4, %v1261_v6  ;;  %v4453_v8 = vpop.f32.mrb[24].mxu0 }
 0x134   : > { %v4517_v9 = vpop.f32.mrb[24].mxu1  ;;  %v4454_v10 = vpop.f32.mrb[25].mxu0 }
 0x135   : > { %v4455_v11 = vadd.f32 %v4454_v10, %v4453_v8  ;;  %v4518_v12 = vpop.f32.mrb[25].mxu1  ;;  %v4456_v13 = vpop.f32.mrb[26].mxu0 }
 0x136   : > { %v4519_v14 = vadd.f32 %v4518_v12, %v4517_v9  ;;  %v4520_v15 = vpop.f32.mrb[26].mxu1  ;;  %v4457_v17 = vpop.f32.mrb[27].mxu0 }
 0x137   : > { %v1266_v19 = vadd.f32 %v4455_v11, %v5896_v36  ;;  %v4458_v20 = vadd.f32 %v4457_v17, %v4456_v13  ;;  %v4521_v21 = vpop.f32.mrb[27].mxu1 }
 0x138   : > { %v4522_v22 = vadd.f32 %v4521_v21, %v4520_v15 }
 0x139   : > { %v5935_v23 = vadd.f32 %v4519_v14, %v1266_v19  ;;  %v1269_v24 = vadd.f32 %v4458_v20, %v5896_v36  ;;  %v4908_v20 = vld [vmem:[%s6703_s3 + $0x180] sm:$0xff]  }
 0x13b   : > { %v5938_v25 = vadd.f32 %v4522_v22, %v1269_v24  ;;  %v4459_v26 = vpop.f32.mrb[28].mxu0  ;;  %v4909_v22 = vld [vmem:[%s6703_s3 + $0x148] sm:$0xff]  }
 0x13c   : > { %v4523_v27 = vpop.f32.mrb[28].mxu1  ;;  %v4460_v28 = vpop.f32.mrb[29].mxu0  ;;  %v4910_v24 = vld [vmem:[%s6703_s3 + $0x1c8] sm:$0xff]  }
 0x13d   : > { %v4461_v29 = vadd.f32 %v4460_v28, %v4459_v26  ;;  %v4524_v30 = vpop.f32.mrb[29].mxu1  ;;  %v4462_v31 = vpop.f32.mrb[30].mxu0 }
 0x13e   : > { %v4525_v33 = vadd.f32 %v4524_v30, %v4523_v27  ;;  %v4526_v35 = vpop.f32.mrb[30].mxu1  ;;  %v4463_v37 = vpop.f32.mrb[31].mxu0 }
 0x13f   : > { %v1274_v38 = vadd.f32 %v4461_v29, %v5896_v36  ;;  %v4464_v39 = vadd.f32 %v4463_v37, %v4462_v31  ;;  %v4527_v40 = vpop.f32.mrb[31].mxu1 }
 0x140   : > { %v4528_v41 = vadd.f32 %v4527_v40, %v4526_v35 }
 0x141   : > { %v5941_v42 = vadd.f32 %v4525_v33, %v1274_v38  ;;  %v1277_v43 = vadd.f32 %v4464_v39, %v5896_v36 }
 0x143   : > { %v5944_v44 = vadd.f32 %v4528_v41, %v1277_v43  ;;  %v4545_v45 = vpop.f32.mrb[32].mxu0 }
 0x144   : > { %v4609_v46 = vpop.f32.mrb[32].mxu1  ;;  %v4546_v47 = vpop.f32.mrb[33].mxu0 }
 0x145   : > { %v4547_v49 = vadd.f32 %v4546_v47, %v4545_v45  ;;  %v4610_v52 = vpop.f32.mrb[33].mxu1  ;;  %v4548_v54 = vpop.f32.mrb[34].mxu0  ;;  %v4911_v47 = vld [vmem:[%s6703_s3 + $0x108] sm:$0xff]  }
 0x146   : > { %v4611_v55 = vadd.f32 %v4610_v52, %v4609_v46  ;;  %v4612_v56 = vpop.f32.mrb[34].mxu1  ;;  %v4549_v57 = vpop.f32.mrb[35].mxu0 }
 0x147   : > { %v1412_v58 = vadd.f32 %v4547_v49, %v5899_v48  ;;  %v4550_v59 = vadd.f32 %v4549_v57, %v4548_v54  ;;  %v4613_v60 = vpop.f32.mrb[35].mxu1  ;;  %v4912_v49 = vld [vmem:[%s6703_s3 + $0x188] sm:$0xff]   ;;  %v4913_v54 = vld [vmem:[%s6703_s3 + $0x150] sm:$0xff]  }
 0x148   : > { %v4614_v61 = vadd.f32 %v4613_v60, %v4612_v56 }
 0x149   : > { %v1509_v62 = vadd.f32 %v4611_v55, %v1412_v58  ;;  %v1415_v63 = vadd.f32 %v4550_v59, %v5902_v50  ;;  %v4907_v50 = vld [vmem:[%s6703_s3 + $0x100] sm:$0xff]   ;;  %v4914_v55 = vld [vmem:[%s6703_s3 + $0x1d0] sm:$0xff]  }
 0x14b   : > { %v1512_v36 = vadd.f32 %v4614_v61, %v1415_v63  ;;  %v4551_v1 = vpop.f32.mrb[36].mxu0  ;;  %v1571_v6 = vmax.f32 %v1509_v62, 0.0 }
 0x14c   : > { %v4615_v3 = vpop.f32.mrb[36].mxu1  ;;  %v4552_v4 = vpop.f32.mrb[37].mxu0 }
 0x14d   : > { %v1572_v8 = vmax.f32 %v1512_v36, 0.0  ;;  %v4553_v9 = vadd.f32 %v4552_v4, %v4551_v1  ;;  %v4616_v10 = vpop.f32.mrb[37].mxu1  ;;  %v4554_v11 = vpop.f32.mrb[38].mxu0 }
 0x14e   : > { %v4617_v12 = vadd.f32 %v4616_v10, %v4615_v3  ;;  %v4618_v13 = vpop.f32.mrb[38].mxu1  ;;  %v4555_v14 = vpop.f32.mrb[39].mxu0 }
 0x14f   : > { %v5948_v15 = vpack.c.bf16 %v1572_v8, %v1571_v6  ;;  %v1420_v48 = vadd.f32 %v4553_v9, %v5905_v0  ;;  %v4556_v17 = vadd.f32 %v4555_v14, %v4554_v11  ;;  %v4619_v19 = vpop.f32.mrb[39].mxu1  ;;  %v4915_v11 = vld [vmem:[%s6703_s3 + $0x110] sm:$0xff]   ;;  %v4917_v14 = vld [vmem:[%s6703_s3 + $0x158] sm:$0xff]  }
 0x150   : > { %v4620_v21 = vadd.f32 %v4619_v19, %v4618_v13 }
 0x151   : > { %v1517_v0 = vadd.f32 %v4617_v12, %v1420_v48  ;;  %v1423_v26 = vadd.f32 %v4556_v17, %v5908_v2  ;;  %4673 = vmatprep.mubr.bf16.mxu0 %v5948_v15  ;;  %4705 = vmatprep.mubr.bf16.mxu1 %v5948_v15  ;;  %v4916_v12 = vld [vmem:[%s6703_s3 + $0x190] sm:$0xff]   ;;  %v4918_v48 = vld [vmem:[%s6703_s3 + $0x1d8] sm:$0xff]  }
 0x152   : > { %4674 = vmatmul.mubr.bf16.vlgmr.msra.gmra.mrb[64].mxu0 %v5948_v15  ;;  %4706 = vmatmul.mubr.bf16.vlgmr.msra.gmra.mrb[64].mxu1 %v5948_v15 }
 0x153   : > { %v1520_v27 = vadd.f32 %v4620_v21, %v1423_v26  ;;  %v4557_v28 = vpop.f32.mrb[40].mxu0  ;;  %4722 = vmatpush3.bf16.xpose.msra.mxu0 %v4907_v50  ;;  %4754 = vmatpush3.bf16.xpose.msra.mxu1 %v4908_v20  ;;  %v1573_v31 = vmax.f32 %v1517_v0, 0.0 }
 0x154   : > { %v4621_v29 = vpop.f32.mrb[40].mxu1  ;;  %v4558_v30 = vpop.f32.mrb[41].mxu0  ;;  %4723 = vmatprep.subr.bf16.mxu0 %v4909_v22  ;;  %4755 = vmatprep.subr.bf16.mxu1 %v4910_v24 }
 0x155   : > { %v1574_v33 = vmax.f32 %v1520_v27, 0.0  ;;  %v4559_v35 = vadd.f32 %v4558_v30, %v4557_v28  ;;  %v4622_v2 = vpop.f32.mrb[41].mxu1  ;;  %v4560_v37 = vpop.f32.mrb[42].mxu0 }
 0x156   : > { %v4623_v38 = vadd.f32 %v4622_v2, %v4621_v29  ;;  %v4624_v39 = vpop.f32.mrb[42].mxu1  ;;  %v4561_v40 = vpop.f32.mrb[43].mxu0  ;;  %v4919_v2 = vld [vmem:[%s6703_s3 + $0x118] sm:$0xff]  }
 0x157   : > { %v5968_v41 = vpack.c.bf16 %v1574_v33, %v1573_v31  ;;  %v1428_v43 = vadd.f32 %v4559_v35, %v5911_v16  ;;  %v4562_v45 = vadd.f32 %v4561_v40, %v4560_v37  ;;  %v4625_v46 = vpop.f32.mrb[43].mxu1  ;;  %v4920_v37 = vld [vmem:[%s6703_s3 + $0x198] sm:$0xff]   ;;  %v4922_v40 = vld [vmem:[%s6703_s3 + $0x1e0] sm:$0xff]  }
 0x158   : > { %v4626_v52 = vadd.f32 %v4625_v46, %v4624_v39  ;;  %v4921_v39 = vld [vmem:[%s6703_s3 + $0x160] sm:$0xff]  }
 0x159   : > { %v1525_v16 = vadd.f32 %v4623_v38, %v1428_v43  ;;  %v1431_v56 = vadd.f32 %v4562_v45, %v5914_v18  ;;  %4675 = vmatprep.mubr.bf16.mxu0 %v5968_v41  ;;  %4707 = vmatprep.mubr.bf16.mxu1 %v5968_v41 }
 0x15a   : > { %4676 = vmatmul.mubr.bf16.gmra.mrb[68].mxu0 %v5968_v41  ;;  %4708 = vmatmul.mubr.bf16.gmra.mrb[68].mxu1 %v5968_v41 }
 0x15b   : > { %v1528_v57 = vadd.f32 %v4626_v52, %v1431_v56  ;;  %v4563_v58 = vpop.f32.mrb[44].mxu0  ;;  %4724 = vmatpush3.bf16.xpose.msra.mxu0 %v4911_v47  ;;  %4756 = vmatpush3.bf16.xpose.msra.mxu1 %v4912_v49  ;;  %v1575_v61 = vmax.f32 %v1525_v16, 0.0 }
 0x15c   : > { %v4627_v59 = vpop.f32.mrb[44].mxu1  ;;  %v4564_v60 = vpop.f32.mrb[45].mxu0  ;;  %4725 = vmatprep.subr.bf16.mxu0 %v4913_v54  ;;  %4757 = vmatprep.subr.bf16.mxu1 %v4914_v55 }
 0x15d   : > { %v1576_v62 = vmax.f32 %v1528_v57, 0.0  ;;  %v4565_v63 = vadd.f32 %v4564_v60, %v4563_v58  ;;  %v4628_v18 = vpop.f32.mrb[45].mxu1  ;;  %v4566_v36 = vpop.f32.mrb[46].mxu0 }
 0x15e   : > { %v4629_v1 = vadd.f32 %v4628_v18, %v4627_v59  ;;  %v4630_v3 = vpop.f32.mrb[46].mxu1  ;;  %v4567_v4 = vpop.f32.mrb[47].mxu0  ;;  %v4924_v18 = vld [vmem:[%s6703_s3 + $0x1a0] sm:$0xff]  }
 0x15f   : > { %v5988_v6 = vpack.c.bf16 %v1576_v62, %v1575_v61  ;;  %v1436_v8 = vadd.f32 %v4565_v63, %v5917_v32  ;;  %v4568_v9 = vadd.f32 %v4567_v4, %v4566_v36  ;;  %v4631_v10 = vpop.f32.mrb[47].mxu1  ;;  %v4923_v63 = vld [vmem:[%s6703_s3 + $0x120] sm:$0xff]  }
 0x160   : > { %v4632_v13 = vadd.f32 %v4631_v10, %v4630_v3  ;;  %v4926_v3 = vld [vmem:[%s6703_s3 + $0x1e8] sm:$0xff]  }
 0x161   : > { %v1533_v32 = vadd.f32 %v4629_v1, %v1436_v8  ;;  %v1439_v17 = vadd.f32 %v4568_v9, %v5920_v34  ;;  %4677 = vmatprep.mubr.bf16.mxu0 %v5988_v6  ;;  %4709 = vmatprep.mubr.bf16.mxu1 %v5988_v6  ;;  %v4925_v1 = vld [vmem:[%s6703_s3 + $0x168] sm:$0xff]  }
 0x162   : > { %4678 = vmatmul.mubr.bf16.gmra.mrb[72].mxu0 %v5988_v6  ;;  %4710 = vmatmul.mubr.bf16.gmra.mrb[72].mxu1 %v5988_v6 }
 0x163   : > { %v1536_v19 = vadd.f32 %v4632_v13, %v1439_v17  ;;  %v4569_v50 = vpop.f32.mrb[48].mxu0  ;;  %4726 = vmatpush3.bf16.xpose.msra.mxu0 %v4915_v11  ;;  %4758 = vmatpush3.bf16.xpose.msra.mxu1 %v4916_v12  ;;  %v1577_v22 = vmax.f32 %v1533_v32, 0.0 }
 0x164   : > { %v4633_v20 = vpop.f32.mrb[48].mxu1  ;;  %v4570_v21 = vpop.f32.mrb[49].mxu0  ;;  %4727 = vmatprep.subr.bf16.mxu0 %v4917_v14  ;;  %4759 = vmatprep.subr.bf16.mxu1 %v4918_v48 }
 0x165   : > { %v1578_v24 = vmax.f32 %v1536_v19, 0.0  ;;  %v4571_v0 = vadd.f32 %v4570_v21, %v4569_v50  ;;  %v4634_v34 = vpop.f32.mrb[49].mxu1  ;;  %v4572_v26 = vpop.f32.mrb[50].mxu0 }
 0x166   : > { %v4635_v27 = vadd.f32 %v4634_v34, %v4633_v20  ;;  %v4636_v28 = vpop.f32.mrb[50].mxu1  ;;  %v4573_v29 = vpop.f32.mrb[51].mxu0 }
 0x167   : > { %v6008_v30 = vpack.c.bf16 %v1578_v24, %v1577_v22  ;;  %v1444_v31 = vadd.f32 %v4571_v0, %v5923_v51  ;;  %v4574_v33 = vadd.f32 %v4573_v29, %v4572_v26  ;;  %v4637_v35 = vpop.f32.mrb[51].mxu1  ;;  %v4927_v24 = vld [vmem:[%s6703_s3 + $0x128] sm:$0xff]   ;;  %v4929_v26 = vld [vmem:[%s6703_s3 + $0x170] sm:$0xff]  }
 0x168   : > { %v4638_v38 = vadd.f32 %v4637_v35, %v4636_v28  ;;  %v4928_v0 = vld [vmem:[%s6703_s3 + $0x1a8] sm:$0xff]  }
 0x169   : > { %v1541_v51 = vadd.f32 %v4635_v27, %v1444_v31  ;;  %v1447_v43 = vadd.f32 %v4574_v33, %v5926_v53  ;;  %4679 = vmatprep.mubr.bf16.mxu0 %v6008_v30  ;;  %4711 = vmatprep.mubr.bf16.mxu1 %v6008_v30  ;;  %v4930_v27 = vld [vmem:[%s6703_s3 + $0x1f0] sm:$0xff]  }
 0x16a   : > { %4680 = vmatmul.mubr.bf16.gmra.mrb[76].mxu0 %v6008_v30  ;;  %4712 = vmatmul.mubr.bf16.gmra.mrb[76].mxu1 %v6008_v30 }
 0x16b   : > { %v1544_v45 = vadd.f32 %v4638_v38, %v1447_v43  ;;  %v4575_v46 = vpop.f32.mrb[52].mxu0  ;;  %4728 = vmatpush3.bf16.xpose.msra.mxu0 %v4919_v2  ;;  %4760 = vmatpush3.bf16.xpose.msra.mxu1 %v4920_v37  ;;  %v1579_v52 = vmax.f32 %v1541_v51, 0.0 }
 0x16c   : > { %v4639_v47 = vpop.f32.mrb[52].mxu1  ;;  %v4576_v49 = vpop.f32.mrb[53].mxu0  ;;  %4729 = vmatprep.subr.bf16.mxu0 %v4921_v39  ;;  %4761 = vmatprep.subr.bf16.mxu1 %v4922_v40 }
 0x16d   : > { %v1580_v54 = vmax.f32 %v1544_v45, 0.0  ;;  %v4577_v55 = vadd.f32 %v4576_v49, %v4575_v46  ;;  %v4640_v53 = vpop.f32.mrb[53].mxu1  ;;  %v4578_v16 = vpop.f32.mrb[54].mxu0 }
 0x16e   : > { %v4641_v56 = vadd.f32 %v4640_v53, %v4639_v47  ;;  %v4642_v57 = vpop.f32.mrb[54].mxu1  ;;  %v4579_v58 = vpop.f32.mrb[55].mxu0  ;;  %v4933_v53 = vld [vmem:[%s6703_s3 + $0x178] sm:$0xff]  }
 0x16f   : > { %v6028_v59 = vpack.c.bf16 %v1580_v54, %v1579_v52  ;;  %v1452_v60 = vadd.f32 %v4577_v55, %v5929_v5  ;;  %v4580_v61 = vadd.f32 %v4579_v58, %v4578_v16  ;;  %v4643_v62 = vpop.f32.mrb[55].mxu1  ;;  %v4931_v52 = vld [vmem:[%s6703_s3 + $0x130] sm:$0xff]   ;;  %v4934_v16 = vld [vmem:[%s6703_s3 + $0x1f8] sm:$0xff]  }
 0x170   : > { %v4644_v36 = vadd.f32 %v4643_v62, %v4642_v57  ;;  %v4932_v54 = vld [vmem:[%s6703_s3 + $0x1b0] sm:$0xff]   ;;  %v4935_v62 = vld [vmem:[%s6703_s3 + $0x138] sm:$0xff]  }
 0x171   : > { %v1549_v5 = vadd.f32 %v4641_v56, %v1452_v60  ;;  %v1455_v4 = vadd.f32 %v4580_v61, %v5932_v7  ;;  %4681 = vmatprep.mubr.bf16.mxu0 %v6028_v59  ;;  %4713 = vmatprep.mubr.bf16.mxu1 %v6028_v59 }
 0x172   : > { %4682 = vmatmul.mubr.bf16.gmra.mrb[80].mxu0 %v6028_v59  ;;  %4714 = vmatmul.mubr.bf16.gmra.mrb[80].mxu1 %v6028_v59 }
 0x173   : > { %v1552_v8 = vadd.f32 %v4644_v36, %v1455_v4  ;;  %v4581_v9 = vpop.f32.mrb[56].mxu0  ;;  %4730 = vmatpush3.bf16.xpose.msra.mxu0 %v4923_v63  ;;  %4762 = vmatpush3.bf16.xpose.msra.mxu1 %v4924_v18  ;;  %v1581_v12 = vmax.f32 %v1549_v5, 0.0 }
 0x174   : > { %v4645_v10 = vpop.f32.mrb[56].mxu1  ;;  %v4582_v11 = vpop.f32.mrb[57].mxu0  ;;  %4731 = vmatprep.subr.bf16.mxu0 %v4925_v1  ;;  %4763 = vmatprep.subr.bf16.mxu1 %v4926_v3 }
 0x175   : > { %v1582_v13 = vmax.f32 %v1552_v8, 0.0  ;;  %v4583_v14 = vadd.f32 %v4582_v11, %v4581_v9  ;;  %v4646_v7 = vpop.f32.mrb[57].mxu1  ;;  %v4584_v48 = vpop.f32.mrb[58].mxu0 }
 0x176   : > { %v4647_v32 = vadd.f32 %v4646_v7, %v4645_v10  ;;  %v4648_v17 = vpop.f32.mrb[58].mxu1  ;;  %v4585_v19 = vpop.f32.mrb[59].mxu0 }
 0x177   : > { %v6048_v50 = vpack.c.bf16 %v1582_v13, %v1581_v12  ;;  %v1460_v20 = vadd.f32 %v4583_v14, %v5935_v23  ;;  %v4586_v21 = vadd.f32 %v4585_v19, %v4584_v48  ;;  %v4649_v22 = vpop.f32.mrb[59].mxu1 }
 0x178   : > { %v4650_v34 = vadd.f32 %v4649_v22, %v4648_v17 }
 0x179   : > { %v1557_v23 = vadd.f32 %v4647_v32, %v1460_v20  ;;  %v1463_v28 = vadd.f32 %v4586_v21, %v5938_v25  ;;  %4683 = vmatprep.mubr.bf16.mxu0 %v6048_v50  ;;  %4715 = vmatprep.mubr.bf16.mxu1 %v6048_v50 }
 0x17a   : > { %4684 = vmatmul.mubr.bf16.gmra.mrb[84].mxu0 %v6048_v50  ;;  %4716 = vmatmul.mubr.bf16.gmra.mrb[84].mxu1 %v6048_v50 }
 0x17b   : > { %v1560_v29 = vadd.f32 %v4650_v34, %v1463_v28  ;;  %v4587_v31 = vpop.f32.mrb[60].mxu0  ;;  %4732 = vmatpush3.bf16.xpose.msra.mxu0 %v4927_v24  ;;  %4764 = vmatpush3.bf16.xpose.msra.mxu1 %v4928_v0  ;;  %v1583_v2 = vmax.f32 %v1557_v23, 0.0 }
 0x17c   : > { %v4651_v33 = vpop.f32.mrb[60].mxu1  ;;  %v4588_v35 = vpop.f32.mrb[61].mxu0  ;;  %4733 = vmatprep.subr.bf16.mxu0 %v4929_v26  ;;  %4765 = vmatprep.subr.bf16.mxu1 %v4930_v27 }
 0x17d   : > { %v1584_v37 = vmax.f32 %v1560_v29, 0.0  ;;  %v4589_v38 = vadd.f32 %v4588_v35, %v4587_v31  ;;  %v4652_v25 = vpop.f32.mrb[61].mxu1  ;;  %v4590_v39 = vpop.f32.mrb[62].mxu0 }
 0x17e   : > { %v4653_v40 = vadd.f32 %v4652_v25, %v4651_v33  ;;  %v4654_v51 = vpop.f32.mrb[62].mxu1  ;;  %v4591_v43 = vpop.f32.mrb[63].mxu0 }
 0x17f   : > { %v1593_v45 = vpack.c.bf16 %v1584_v37, %v1583_v2  ;;  %v1468_v46 = vadd.f32 %v4589_v38, %v5941_v42  ;;  %v4592_v47 = vadd.f32 %v4591_v43, %v4590_v39  ;;  %v4655_v49 = vpop.f32.mrb[63].mxu1 }
 0x180   : > { %v4656_v55 = vadd.f32 %v4655_v49, %v4654_v51 }
 0x181   : > { %v1565_v42 = vadd.f32 %v4653_v40, %v1468_v46  ;;  %v1471_v56 = vadd.f32 %v4592_v47, %v5944_v44  ;;  %4685 = vmatprep.mubr.bf16.mxu0 %v1593_v45  ;;  %4717 = vmatprep.mubr.bf16.mxu1 %v1593_v45  ;;  %v4936_v44 = vld [vmem:[%s6703_s3 + $0x1b8] sm:$0xff]  }
 0x182   : > { %4686 = vmatmul.mubr.bf16.gmra.mrb[88].mxu0 %v1593_v45  ;;  %4718 = vmatmul.mubr.bf16.gmra.mrb[88].mxu1 %v1593_v45 }
 0x183   : > { %v1568_v57 = vadd.f32 %v4656_v55, %v1471_v56  ;;  %4734 = vmatpush3.bf16.xpose.msra.mxu0 %v4931_v52  ;;  %4766 = vmatpush3.bf16.xpose.msra.mxu1 %v4932_v54  ;;  %v1585_v58 = vmax.f32 %v1565_v42, 0.0 }
 0x184   : > { %4735 = vmatprep.subr.bf16.mxu0 %v4933_v53  ;;  %4767 = vmatprep.subr.bf16.mxu1 %v4934_v16 }
 0x185   : > { %v1586_v60 = vmax.f32 %v1568_v57, 0.0 }
 0x187   : > { %v1594_v61 = vpack.c.bf16 %v1586_v60, %v1585_v58 }
 0x189   : > { %4687 = vmatprep.mubr.bf16.mxu0 %v1594_v61  ;;  %4719 = vmatprep.mubr.bf16.mxu1 %v1594_v61 }
 0x18a   : > { %4688 = vmatmul.mubr.bf16.gmra.mrb[92].mxu0 %v1594_v61  ;;  %4720 = vmatmul.mubr.bf16.gmra.mrb[92].mxu1 %v1594_v61 }
 0x18b   : > { %4736 = vmatpush3.bf16.xpose.msra.mxu0 %v4935_v62  ;;  %4737 = vmatprep.mubr.bf16.mxu0 %v5948_v15 }
 0x18c   : > { %4768 = vmatpush3.bf16.xpose.msra.mxu1 %v4936_v44  ;;  %4769 = vmatprep.mubr.bf16.mxu1 %v5948_v15 }
 0x192   : > { %4738 = vmatmul.mubr.bf16.vlgmr.msra.gmra.mrb[96].mxu0 %v5948_v15 }
 0x193   : > { %4770 = vmatmul.mubr.bf16.vlgmr.msra.gmra.mrb[96].mxu1 %v5948_v15  ;;  %4739 = vmatprep.mubr.bf16.mxu0 %v5968_v41  ;;  %v1746_v15 = vlaneseq }
 0x194   : > { %4771 = vmatprep.mubr.bf16.mxu1 %v5968_v41 }
 0x19a   : > { %4740 = vmatmul.mubr.bf16.gmra.mrb[100].mxu0 %v5968_v41 }
 0x19b   : > { %4772 = vmatmul.mubr.bf16.gmra.mrb[100].mxu1 %v5968_v41  ;;  %4741 = vmatprep.mubr.bf16.mxu0 %v5988_v6  ;;  %v6112_v41 = vshrl.u32 %v1746_v15, 7 }
 0x19c   : > { %4773 = vmatprep.mubr.bf16.mxu1 %v5988_v6 }
 0x19d   : > { %v1752_v63 = vsub.s32 1, %v6112_v41  ;;  %v1760_v18 = vsub.s32 3, %v6112_v41 }
 0x1a2   : > { %4742 = vmatmul.mubr.bf16.gmra.mrb[104].mxu0 %v5988_v6 }
 0x1a3   : > { %4774 = vmatmul.mubr.bf16.gmra.mrb[104].mxu1 %v5988_v6  ;;  %4743 = vmatprep.mubr.bf16.mxu0 %v6008_v30  ;;  %v1748_v6 = vsub.s32 0, %v6112_v41 }
 0x1a4   : > { %4775 = vmatprep.mubr.bf16.mxu1 %v6008_v30 }
 0x1aa   : > { %4744 = vmatmul.mubr.bf16.gmra.mrb[108].mxu0 %v6008_v30 }
 0x1ab   : > { %4776 = vmatmul.mubr.bf16.gmra.mrb[108].mxu1 %v6008_v30  ;;  %4745 = vmatprep.mubr.bf16.mxu0 %v6028_v59  ;;  %v1756_v30 = vsub.s32 2, %v6112_v41 }
 0x1ac   : > { %4777 = vmatprep.mubr.bf16.mxu1 %v6028_v59 }
 0x1b2   : > { %4746 = vmatmul.mubr.bf16.gmra.mrb[112].mxu0 %v6028_v59 }
 0x1b3   : > { %4778 = vmatmul.mubr.bf16.gmra.mrb[112].mxu1 %v6028_v59  ;;  %4747 = vmatprep.mubr.bf16.mxu0 %v6048_v50  ;;  %v6119_v59 = vld [vmem:[%s6704_s4] sm:$0xff] }
 0x1b4   : > { %4779 = vmatprep.mubr.bf16.mxu1 %v6048_v50  ;;  %v6124_v36 = vrot.slane %v6119_v59, %v1748_v6  ;;  %v6127_v1 = vrot.slane %v6119_v59, %v1756_v30  ;;  %v6130_v3 = vrot.slane %v6119_v59, %v1752_v63  ;;  %v6133_v5 = vrot.slane %v6119_v59, %v1760_v18 }
 0x1ba   : > { %4748 = vmatmul.mubr.bf16.gmra.mrb[116].mxu0 %v6048_v50 }
 0x1bb   : > { %4780 = vmatmul.mubr.bf16.gmra.mrb[116].mxu1 %v6048_v50  ;;  %4749 = vmatprep.mubr.bf16.mxu0 %v1593_v45 }
 0x1bc   : > { %4781 = vmatprep.mubr.bf16.mxu1 %v1593_v45 }
 0x1c2   : > { %4750 = vmatmul.mubr.bf16.gmra.mrb[120].mxu0 %v1593_v45 }
 0x1c3   : > { %4782 = vmatmul.mubr.bf16.gmra.mrb[120].mxu1 %v1593_v45  ;;  %4751 = vmatprep.mubr.bf16.mxu0 %v1594_v61 }
 0x1c4   : > { %4783 = vmatprep.mubr.bf16.mxu1 %v1594_v61 }
 0x1ca   : > { %4752 = vmatmul.mubr.bf16.gmra.mrb[124].mxu0 %v1594_v61 }
 0x1cb   : > { %4784 = vmatmul.mubr.bf16.gmra.mrb[124].mxu1 %v1594_v61 }
 0x225   : > { %v2204_v4 = vpop.f32.mrb[64].mxu0  ;;  %v2317_v8 = vpop.f32.mrb[64].mxu1 }
 0x226   : > { %v2205_v9 = vadd.f32 %v2204_v4, %v6124_v36  ;;  %v2318_v10 = vadd.f32 %v2317_v8, %v6127_v1  ;;  %v2206_v11 = vpop.f32.mrb[65].mxu0  ;;  %v2319_v12 = vpop.f32.mrb[65].mxu1 }
 0x227   : > { %v2207_v13 = vadd.f32 %v2206_v11, %v6130_v3  ;;  %v2320_v14 = vadd.f32 %v2319_v12, %v6133_v5  ;;  %v2208_v7 = vpop.f32.mrb[66].mxu0  ;;  %v2321_v48 = vpop.f32.mrb[66].mxu1 }
 0x228   : > { %v4141_v32 = vmul.f32 -1.442695, %v2205_v9  ;;  %v4143_v17 = vmul.f32 -1.442695, %v2318_v10  ;;  %v2209_v19 = vadd.f32 %v2208_v7, %v6124_v36  ;;  %v2322_v50 = vadd.f32 %v2321_v48, %v6127_v1  ;;  %v2210_v20 = vpop.f32.mrb[67].mxu0  ;;  %v2323_v21 = vpop.f32.mrb[67].mxu1 }
 0x229   : > { %v4142_v22 = vmul.f32 -1.442695, %v2207_v13  ;;  %v4144_v24 = vmul.f32 -1.442695, %v2320_v14  ;;  %v2211_v0 = vadd.f32 %v2210_v20, %v6130_v3  ;;  %v2324_v34 = vadd.f32 %v2323_v21, %v6133_v5 }
 0x22a   : > { %4937 = vpow2.f32 %v4141_v32  ;;  %v4149_v26 = vmul.f32 -1.442695, %v2209_v19  ;;  %v4151_v27 = vmul.f32 -1.442695, %v2322_v50 }
 0x22b   : > { %4939 = vpow2.f32 %v4143_v17  ;;  %v4150_v23 = vmul.f32 -1.442695, %v2211_v0  ;;  %v4152_v28 = vmul.f32 -1.442695, %v2324_v34 }
 0x22c   : > { %4941 = vpow2.f32 %v4142_v22 }
 0x22d   : > { %4943 = vpow2.f32 %v4144_v24  ;;  %v2214_v29 = vpop.f32.mrb[68].mxu0  ;;  %v2327_v31 = vpop.f32.mrb[68].mxu1 }
 0x22e   : > { %4945 = vpow2.f32 %v4149_v26  ;;  %v2215_v33 = vadd.f32 %v2214_v29, %v6124_v36  ;;  %v2328_v35 = vadd.f32 %v2327_v31, %v6127_v1  ;;  %v2216_v2 = vpop.f32.mrb[69].mxu0  ;;  %v2329_v37 = vpop.f32.mrb[69].mxu1 }
 0x22f   : > { %4947 = vpow2.f32 %v4151_v27  ;;  %v2217_v38 = vadd.f32 %v2216_v2, %v6130_v3  ;;  %v2330_v25 = vadd.f32 %v2329_v37, %v6133_v5  ;;  %v2218_v39 = vpop.f32.mrb[70].mxu0  ;;  %v2331_v40 = vpop.f32.mrb[70].mxu1 }
 0x230   : > { %4949 = vpow2.f32 %v4150_v23  ;;  %v4157_v51 = vmul.f32 -1.442695, %v2215_v33  ;;  %v4159_v43 = vmul.f32 -1.442695, %v2328_v35  ;;  %v2219_v45 = vadd.f32 %v2218_v39, %v6124_v36  ;;  %v2220_v46 = vpop.f32.mrb[71].mxu0  ;;  %v2333_v47 = vpop.f32.mrb[71].mxu1 }
 0x231   : > { %4951 = vpow2.f32 %v4152_v28  ;;  %v4158_v49 = vmul.f32 -1.442695, %v2217_v38  ;;  %v4160_v52 = vmul.f32 -1.442695, %v2330_v25  ;;  %v2332_v48 = vadd.f32 %v2331_v40, %v6127_v1 }
 0x232   : > { %4953 = vpow2.f32 %v4157_v51  ;;  %v4165_v54 = vmul.f32 -1.442695, %v2219_v45  ;;  %v2221_v19 = vadd.f32 %v2220_v46, %v6130_v3  ;;  %v2334_v22 = vadd.f32 %v2333_v47, %v6133_v5 }
 0x233   : > { %4955 = vpow2.f32 %v4159_v43  ;;  %v4167_v33 = vmul.f32 -1.442695, %v2332_v48 }
 0x234   : > { %v4938_v55 = vpop.eup %4937  ;;  %4957 = vpow2.f32 %v4158_v49  ;;  %v4166_v39 = vmul.f32 -1.442695, %v2221_v19  ;;  %v4168_v45 = vmul.f32 -1.442695, %v2334_v22 }
 0x235   : > { %v4940_v53 = vpop.eup %4939  ;;  %v3006_v16 = vadd.f32 1.0, %v4938_v55  ;;  %4959 = vpow2.f32 %v4160_v52  ;;  %v2224_v42 = vpop.f32.mrb[72].mxu0 }
 0x236   : > { %v2337_v56 = vpop.f32.mrb[72].mxu1  ;;  %v4942_v57 = vpop.eup %4941  ;;  %v3008_v58 = vadd.f32 1.0, %v4940_v53  ;;  %4961 = vpow2.f32 %v4165_v54  ;;  %v2225_v27 = vadd.f32 %v2224_v42, %v6124_v36 }
 0x237   : > { %v2226_v60 = vpop.f32.mrb[73].mxu0  ;;  %v2339_v61 = vpop.f32.mrb[73].mxu1  ;;  %4963 = vrcp.f32 %v3006_v16  ;;  %v3007_v44 = vadd.f32 1.0, %v4942_v57  ;;  %v2338_v35 = vadd.f32 %v2337_v56, %v6127_v1 }
 0x238   : > { %v4944_v62 = vpop.eup %4943  ;;  %v2228_v15 = vpop.f32.mrb[74].mxu0  ;;  %4965 = vrcp.f32 %v3008_v58  ;;  %v2227_v40 = vadd.f32 %v2226_v60, %v6130_v3  ;;  %v2340_v46 = vadd.f32 %v2339_v61, %v6133_v5  ;;  %v4173_v49 = vmul.f32 -1.442695, %v2225_v27 }
 0x239   : > { %v2341_v6 = vpop.f32.mrb[74].mxu1  ;;  %v4946_v30 = vpop.eup %4945  ;;  %v3009_v63 = vadd.f32 1.0, %v4944_v62  ;;  %4967 = vrcp.f32 %v3007_v44  ;;  %v2229_v52 = vadd.f32 %v2228_v15, %v6124_v36  ;;  %v4175_v53 = vmul.f32 -1.442695, %v2338_v35 }
 0x23a   : > { %v6148_v18 = vpop.f32.mrb[75].mxu0  ;;  %v4948_v4 = vpop.eup %4947  ;;  %v3014_v8 = vadd.f32 1.0, %v4946_v30  ;;  %v2342_v16 = vadd.f32 %v2341_v6, %v6127_v1  ;;  %v4174_v57 = vmul.f32 -1.442695, %v2227_v40  ;;  %v4176_v44 = vmul.f32 -1.442695, %v2340_v46 }
 0x23b   : > { %v6150_v9 = vpop.f32.mrb[75].mxu1  ;;  %v4950_v10 = vpop.eup %4949  ;;  %4969 = vrcp.f32 %v3009_v63  ;;  %v3016_v11 = vadd.f32 1.0, %v4948_v4  ;;  %v2231_v58 = vadd.f32 %v6148_v18, %v6130_v3  ;;  %v4181_v4 = vmul.f32 -1.442695, %v2229_v52 }
 0x23c   : > { %v4952_v12 = vpop.eup %4951  ;;  %4971 = vrcp.f32 %v3014_v8  ;;  %v3015_v13 = vadd.f32 1.0, %v4950_v10  ;;  %v2344_v15 = vadd.f32 %v6150_v9, %v6133_v5 }
 0x23d   : > { %v4954_v14 = vpop.eup %4953  ;;  %4973 = vrcp.f32 %v3016_v11  ;;  %v3017_v7 = vadd.f32 1.0, %v4952_v12  ;;  %v2234_v50 = vpop.f32.mrb[76].mxu0 }
 0x23e   : > { %v4956_v32 = vpop.eup %4955  ;;  %4975 = vrcp.f32 %v3015_v13  ;;  %v3022_v17 = vadd.f32 1.0, %v4954_v14  ;;  %v2347_v24 = vpop.f32.mrb[76].mxu1  ;;  %v2235_v18 = vadd.f32 %v2234_v50, %v6124_v36  ;;  %v4183_v13 = vmul.f32 -1.442695, %v2342_v16 }
 0x23f   : > { %v4958_v20 = vpop.eup %4957  ;;  %4977 = vrcp.f32 %v3017_v7  ;;  %v3024_v21 = vadd.f32 1.0, %v4956_v32  ;;  %v6155_v0 = vpop.f32.mrb[77].mxu0  ;;  %v2348_v9 = vadd.f32 %v2347_v24, %v6127_v1  ;;  %v4184_v50 = vmul.f32 -1.442695, %v2344_v15 }
 0x240   : > { %v4960_v34 = vpop.eup %4959  ;;  %4979 = vrcp.f32 %v3022_v17  ;;  %v3023_v26 = vadd.f32 1.0, %v4958_v20  ;;  %v6158_v23 = vpop.f32.mrb[77].mxu1  ;;  %v4182_v17 = vmul.f32 -1.442695, %v2231_v58  ;;  %v4189_v22 = vmul.f32 -1.442695, %v2235_v18 }
 0x241   : > { %v6160_v28 = vpop.f32.mrb[78].mxu0  ;;  %v4962_v29 = vpop.eup %4961  ;;  %4981 = vrcp.f32 %v3024_v21  ;;  %v3025_v31 = vadd.f32 1.0, %v4960_v34  ;;  %v4191_v27 = vmul.f32 -1.442695, %v2348_v9  ;;  %v2350_v16 = vadd.f32 %v6158_v23, %v6133_v5 }
 0x242   : > { %v6163_v2 = vpop.f32.mrb[78].mxu1  ;;  %v6165_v37 = vpop.f32.mrb[79].mxu0  ;;  %4983 = vrcp.f32 %v3023_v26  ;;  %v3030_v25 = vadd.f32 1.0, %v4962_v29 }
 0x243   : > { %v4964_v38 = vpop.eup %4963  ;;  %v6168_v51 = vpop.f32.mrb[79].mxu1  ;;  %4985 = vrcp.f32 %v3025_v31  ;;  %v6242_v9 = vmul.f32 -1.442695, %v2350_v16 }
 0x244   : > { %v4966_v43 = vpop.eup %4965  ;;  %4987 = vrcp.f32 %v3030_v25 }
 0x245   : > { %v4968_v47 = vpop.eup %4967  ;;  %4989 = vpow2.f32 %v4167_v33  ;;  %v6182_v60 = vpop.f32.mrb[80].mxu0  ;;  %v2237_v33 = vadd.f32 %v6155_v0, %v6130_v3 }
 0x246   : > { %v4970_v54 = vpop.eup %4969  ;;  %v4337_v55 = vpack.c.bf16 %v4968_v47, %v4964_v38  ;;  %4991 = vpow2.f32 %v4166_v39  ;;  %v6184_v61 = vpop.f32.mrb[80].mxu1 }
 0x247   : > { %v4972_v42 = vpop.eup %4971  ;;  %v4338_v56 = vpack.c.bf16 %v4970_v54, %v4966_v43  ;;  %4993 = vpow2.f32 %v4168_v45  ;;  %v6189_v6 = vpop.f32.mrb[81].mxu0  ;;  %v6228_v58 = vmul.f32 -1.442695, %v2237_v33 }
 0x248   : > { %v4974_v62 = vpop.eup %4973  ;;  %3774 = vst [vmem:[%s6176_s29] sm:$0xff] %v4337_v55  ;;  %v6191_v30 = vpop.f32.mrb[81].mxu1  ;;  %4995 = vpow2.f32 %v4173_v49 }
 0x249   : > { %v4976_v63 = vpop.eup %4975  ;;  %3775 = vst [vmem:[%s6176_s29 + $0x8] sm:$0xff] %v4338_v56  ;;  %v6195_v8 = vpop.f32.mrb[82].mxu0  ;;  %4997 = vpow2.f32 %v4175_v53 }
 0x24a   : > { %v2361_v10 = vpop.f32.mrb[82].mxu1  ;;  %v4978_v11 = vpop.eup %4977  ;;  %v4341_v12 = vpack.c.bf16 %v4976_v63, %v4972_v42  ;;  %4999 = vpow2.f32 %v4174_v57 }
 0x24b   : > { %v6198_v14 = vpop.f32.mrb[83].mxu0  ;;  %v2363_v7 = vpop.f32.mrb[83].mxu1  ;;  %v4342_v32 = vpack.c.bf16 %v4978_v11, %v4974_v62  ;;  %5001 = vpow2.f32 %v4176_v44  ;;  %v6202_v20 = vadd.f32 %v2361_v10, %v6127_v1 }
 0x24c   : > { %v4980_v48 = vpop.eup %4979  ;;  %3778 = vst [vmem:[%s6176_s29 + $0x20] sm:$0xff] %v4341_v12  ;;  %5003 = vpow2.f32 %v4181_v4  ;;  %v6206_v24 = vadd.f32 %v2363_v7, %v6133_v5  ;;  %v2239_v7 = vadd.f32 %v6160_v28, %v6124_v36 }
 0x24d   : > { %v4982_v19 = vpop.eup %4981  ;;  %3779 = vst [vmem:[%s6176_s29 + $0x28] sm:$0xff] %v4342_v32  ;;  %5005 = vpow2.f32 %v4183_v13  ;;  %v2254_v35 = vpop.f32.mrb[84].mxu0 }
 0x24e   : > { %v4984_v21 = vpop.eup %4983  ;;  %5007 = vpow2.f32 %v4182_v17  ;;  %v2367_v38 = vpop.f32.mrb[84].mxu1  ;;  %v6214_v39 = vadd.f32 %v2254_v35, %v6124_v36  ;;  %v2352_v17 = vadd.f32 %v6163_v2, %v6127_v1 }
 0x24f   : > { %v4986_v34 = vpop.eup %4985  ;;  %v4345_v26 = vpack.c.bf16 %v4984_v21, %v4980_v48  ;;  %5009 = vpow2.f32 %v4184_v50  ;;  %v6217_v40 = vadd.f32 %v2367_v38, %v6127_v1  ;;  %v2256_v43 = vpop.f32.mrb[85].mxu0 }
 0x250   : > { %v6208_v29 = vpop.eup %4987  ;;  %v4346_v31 = vpack.c.bf16 %v4986_v34, %v4982_v19  ;;  %v2369_v45 = vpop.f32.mrb[85].mxu1  ;;  %5011 = vpow2.f32 %v4189_v22  ;;  %v6221_v49 = vadd.f32 %v2256_v43, %v6130_v3  ;;  %v2241_v19 = vadd.f32 %v6165_v37, %v6130_v3 }
 0x251   : > { %v4990_v25 = vpop.eup %4989  ;;  %3782 = vst [vmem:[%s6176_s29 + $0x40] sm:$0xff] %v4345_v26  ;;  %v6224_v0 = vadd.f32 %v2369_v45, %v6133_v5  ;;  %v2258_v52 = vpop.f32.mrb[86].mxu0  ;;  %5013 = vpow2.f32 %v4191_v27  ;;  %v2354_v34 = vadd.f32 %v6168_v51, %v6133_v5  ;;  %v4197_v51 = vmul.f32 -1.442695, %v2239_v7 }
 0x252   : > { %v4992_v46 = vpop.eup %4991  ;;  %3783 = vst [vmem:[%s6176_s29 + $0x48] sm:$0xff] %v4346_v31  ;;  %v3032_v47 = vadd.f32 1.0, %v4990_v25  ;;  %v2371_v54 = vpop.f32.mrb[86].mxu1  ;;  %v6231_v63 = vadd.f32 %v2258_v52, %v6124_v36  ;;  %v2358_v7 = vadd.f32 %v6184_v61, %v6127_v1 }
 0x253   : > { %v4994_v55 = vpop.eup %4993  ;;  %v3031_v53 = vadd.f32 1.0, %v4992_v46  ;;  %v2260_v42 = vpop.f32.mrb[87].mxu0  ;;  %v6234_v4 = vadd.f32 %v2371_v54, %v6127_v1 }
 0x254   : > { %v4996_v56 = vpop.eup %4995  ;;  %5015 = vrcp.f32 %v3032_v47  ;;  %v3033_v57 = vadd.f32 1.0, %v4994_v55  ;;  %v2373_v62 = vpop.f32.mrb[87].mxu1  ;;  %v6237_v23 = vadd.f32 %v2260_v42, %v6130_v3  ;;  %v4199_v55 = vmul.f32 -1.442695, %v2352_v17 }
 0x255   : > { %v4998_v44 = vpop.eup %4997  ;;  %5017 = vrcp.f32 %v3031_v53  ;;  %v3038_v15 = vadd.f32 1.0, %v4996_v56  ;;  %v6240_v11 = vadd.f32 %v2373_v62, %v6133_v5  ;;  %v2264_v50 = vpop.f32.mrb[88].mxu0  ;;  %v4198_v53 = vmul.f32 -1.442695, %v2241_v19 }
 0x256   : > { %v5000_v18 = vpop.eup %4999  ;;  %5019 = vrcp.f32 %v3033_v57  ;;  %v3040_v10 = vadd.f32 1.0, %v4998_v44  ;;  %v6253_v26 = vadd.f32 %v2264_v50, %v6124_v36  ;;  %v2377_v28 = vpop.f32.mrb[88].mxu1  ;;  %v2245_v57 = vadd.f32 %v6182_v60, %v6124_v36 }
 0x257   : > { %v5002_v12 = vpop.eup %5001  ;;  %5021 = vrcp.f32 %v3038_v15  ;;  %v3039_v13 = vadd.f32 1.0, %v5000_v18  ;;  %v2266_v27 = vpop.f32.mrb[89].mxu0  ;;  %v6256_v2 = vadd.f32 %v2377_v28, %v6127_v1  ;;  %v2247_v17 = vadd.f32 %v6189_v6, %v6130_v3 }
 0x258   : > { %v5004_v48 = vpop.eup %5003  ;;  %5023 = vrcp.f32 %v3040_v10  ;;  %v3041_v32 = vadd.f32 1.0, %v5002_v12  ;;  %v6259_v37 = vadd.f32 %v2266_v27, %v6130_v3  ;;  %v2379_v35 = vpop.f32.mrb[89].mxu1  ;;  %v2360_v19 = vadd.f32 %v6191_v30, %v6133_v5 }
 0x259   : > { %v5006_v21 = vpop.eup %5005  ;;  %5025 = vrcp.f32 %v3039_v13  ;;  %v3046_v22 = vadd.f32 1.0, %v5004_v48  ;;  %v2268_v38 = vpop.f32.mrb[90].mxu0  ;;  %v6262_v45 = vadd.f32 %v2379_v35, %v6133_v5  ;;  %v4200_v13 = vmul.f32 -1.442695, %v2354_v34 }
 0x25a   : > { %v5008_v31 = vpop.eup %5007  ;;  %5027 = vrcp.f32 %v3041_v32  ;;  %v3048_v33 = vadd.f32 1.0, %v5006_v21  ;;  %v2381_v46 = vpop.f32.mrb[90].mxu1  ;;  %v6267_v62 = vadd.f32 %v2268_v38, %v6124_v36  ;;  %v4205_v61 = vmul.f32 -1.442695, %v2245_v57 }
 0x25b   : > { %v5010_v25 = vpop.eup %5009  ;;  %5029 = vrcp.f32 %v3046_v22  ;;  %v3047_v43 = vadd.f32 1.0, %v5008_v31  ;;  %v2270_v47 = vpop.f32.mrb[91].mxu0  ;;  %v6270_v18 = vadd.f32 %v2381_v46, %v6127_v1 }
 0x25c   : > { %v5012_v52 = vpop.eup %5011  ;;  %5031 = vrcp.f32 %v3048_v33  ;;  %v3049_v54 = vadd.f32 1.0, %v5010_v25  ;;  %v2383_v16 = vpop.f32.mrb[91].mxu1  ;;  %v6273_v10 = vadd.f32 %v2270_v47, %v6130_v3  ;;  %v2249_v25 = vadd.f32 %v6195_v8, %v6124_v36 }
 0x25d   : > { %v5014_v42 = vpop.eup %5013  ;;  %5033 = vrcp.f32 %v3047_v43  ;;  %v3054_v56 = vadd.f32 1.0, %v5012_v52  ;;  %v6278_v60 = vadd.f32 %v2383_v16, %v6133_v5  ;;  %v2274_v50 = vpop.f32.mrb[92].mxu0  ;;  %v4207_v16 = vmul.f32 -1.442695, %v2358_v7 }
 0x25e   : > { %v5016_v44 = vpop.eup %5015  ;;  %5035 = vrcp.f32 %v3049_v54  ;;  %v3056_v15 = vadd.f32 1.0, %v5014_v42  ;;  %v2387_v21 = vpop.f32.mrb[92].mxu1  ;;  %v6287_v28 = vadd.f32 %v2274_v50, %v6124_v36  ;;  %v2251_v8 = vadd.f32 %v6198_v14, %v6130_v3 }
 0x25f   : > { %v5018_v12 = vpop.eup %5017  ;;  %5037 = vrcp.f32 %v3054_v56  ;;  %v2276_v27 = vpop.f32.mrb[93].mxu0  ;;  %v6292_v6 = vadd.f32 %v2387_v21, %v6127_v1  ;;  %v4215_v14 = vmul.f32 -1.442695, %v6202_v20 }
 0x260   : > { %v5020_v48 = vpop.eup %5019  ;;  %v4349_v32 = vpack.c.bf16 %v5018_v12, %v6208_v29  ;;  %5039 = vrcp.f32 %v3056_v15  ;;  %v2389_v29 = vpop.f32.mrb[93].mxu1  ;;  %v6295_v30 = vadd.f32 %v2276_v27, %v6130_v3 }
 0x261   : > { %v5022_v22 = vpop.eup %5021  ;;  %v4350_v34 = vpack.c.bf16 %v5020_v48, %v5016_v44  ;;  %5041 = vpow2.f32 %v6228_v58  ;;  %v6298_v33 = vadd.f32 %v2389_v29, %v6133_v5  ;;  %v2278_v58 = vpop.f32.mrb[94].mxu0  ;;  %v4214_v48 = vmul.f32 -1.442695, %v2251_v8 }
 0x262   : > { %v5024_v31 = vpop.eup %5023  ;;  %3786 = vst [vmem:[%s6176_s29 + $0x60] sm:$0xff] %v4349_v32  ;;  %5043 = vpow2.f32 %v6242_v9  ;;  %v2391_v35 = vpop.f32.mrb[94].mxu1  ;;  %v6304_v9 = vadd.f32 %v2278_v58, %v6124_v36  ;;  %v4208_v36 = vmul.f32 -1.442695, %v2360_v19 }
 0x263   : > { %v5026_v38 = vpop.eup %5025  ;;  %3787 = vst [vmem:[%s6176_s29 + $0x68] sm:$0xff] %v4350_v34  ;;  %5045 = vpow2.f32 %v4197_v51  ;;  %v6307_v43 = vadd.f32 %v2391_v35, %v6127_v1  ;;  %v2280_v46 = vpop.f32.mrb[95].mxu0  ;;  %v4206_v51 = vmul.f32 -1.442695, %v2247_v17 }
 0x264   : > { %v2393_v47 = vpop.f32.mrb[95].mxu1  ;;  %v5028_v52 = vpop.eup %5027  ;;  %v4353_v54 = vpack.c.bf16 %v5026_v38, %v5022_v22  ;;  %5047 = vpow2.f32 %v4199_v55  ;;  %v6313_v1 = vadd.f32 %v2280_v46, %v6130_v3  ;;  %v4213_v55 = vmul.f32 -1.442695, %v2249_v25 }
 0x265   : > { %v5030_v42 = vpop.eup %5029  ;;  %v4354_v56 = vpack.c.bf16 %v5028_v52, %v5024_v31  ;;  %5049 = vpow2.f32 %v4198_v53  ;;  %v6316_v44 = vadd.f32 %v2393_v47, %v6133_v5  ;;  %v6320_v7 = vpop.f32.mrb[96].mxu0 }
 0x266   : > { %v5032_v57 = vpop.eup %5031  ;;  %3790 = vst [vmem:[%s6176_s29 + $0x80] sm:$0xff] %v4353_v54  ;;  %5051 = vpow2.f32 %v4200_v13  ;;  %v6324_v5 = vpop.f32.mrb[96].mxu1 }
 0x267   : > { %v5034_v15 = vpop.eup %5033  ;;  %3791 = vst [vmem:[%s6176_s29 + $0x88] sm:$0xff] %v4354_v56  ;;  %5053 = vpow2.f32 %v4205_v61  ;;  %v6326_v32 = vpop.f32.mrb[97].mxu0 }
 0x268   : > { %v5036_v53 = vpop.eup %5035  ;;  %v4357_v12 = vpack.c.bf16 %v5034_v15, %v5030_v42  ;;  %5055 = vpow2.f32 %v4207_v16  ;;  %v6331_v19 = vpop.f32.mrb[97].mxu1 }
 0x269   : > { %v6322_v13 = vpop.eup %5037  ;;  %v4358_v3 = vpack.c.bf16 %v5036_v53, %v5032_v57  ;;  %5057 = vpow2.f32 %v4206_v51  ;;  %v6333_v50 = vpop.f32.mrb[98].mxu0 }
 0x26a   : > { %v6328_v17 = vpop.eup %5039  ;;  %3794 = vst [vmem:[%s6176_s29 + $0xa0] sm:$0xff] %v4357_v12  ;;  %5059 = vpow2.f32 %v4208_v36  ;;  %v6336_v21 = vpop.f32.mrb[98].mxu1 }
 0x26b   : > { %v5042_v20 = vpop.eup %5041  ;;  %3795 = vst [vmem:[%s6176_s29 + $0xa8] sm:$0xff] %v4358_v3  ;;  %5061 = vpow2.f32 %v4213_v55  ;;  %v6338_v22 = vpop.f32.mrb[99].mxu0 }
 0x26c   : > { %v5044_v34 = vpop.eup %5043  ;;  %v3055_v61 = vadd.f32 1.0, %v5042_v20  ;;  %5063 = vpow2.f32 %v4215_v14  ;;  %v6340_v27 = vpop.f32.mrb[99].mxu1 }
 0x26d   : > { %v5046_v29 = vpop.eup %5045  ;;  %v3057_v31 = vadd.f32 1.0, %v5044_v34  ;;  %5065 = vpow2.f32 %v4214_v48  ;;  %v6342_v52 = vpop.f32.mrb[100].mxu0 }
 0x26e   : > { %v5048_v58 = vpop.eup %5047  ;;  %5067 = vrcp.f32 %v3055_v61  ;;  %v3062_v35 = vadd.f32 1.0, %v5046_v29  ;;  %v6344_v42 = vpop.f32.mrb[100].mxu1 }
 0x26f   : > { %v5050_v38 = vpop.eup %5049  ;;  %5069 = vrcp.f32 %v3057_v31  ;;  %v3064_v25 = vadd.f32 1.0, %v5048_v58  ;;  %v6346_v56 = vpop.f32.mrb[101].mxu0 }
 0x270   : > { %v5052_v46 = vpop.eup %5051  ;;  %5071 = vrcp.f32 %v3062_v35  ;;  %v3063_v47 = vadd.f32 1.0, %v5050_v38  ;;  %v6348_v57 = vpop.f32.mrb[101].mxu1  ;;  %v4216_v35 = vmul.f32 -1.442695, %v6206_v24 }
 0x271   : > { %v5054_v54 = vpop.eup %5053  ;;  %5073 = vrcp.f32 %v3064_v25  ;;  %v3065_v16 = vadd.f32 1.0, %v5052_v46  ;;  %v6350_v36 = vpop.f32.mrb[102].mxu0  ;;  %v4221_v46 = vmul.f32 -1.442695, %v6214_v39 }
 0x272   : > { %v5056_v51 = vpop.eup %5055  ;;  %5075 = vrcp.f32 %v3063_v47  ;;  %v3070_v8 = vadd.f32 1.0, %v5054_v54  ;;  %v6352_v53 = vpop.f32.mrb[102].mxu1 }
 0x273   : > { %v5058_v15 = vpop.eup %5057  ;;  %5077 = vrcp.f32 %v3065_v16  ;;  %v3072_v55 = vadd.f32 1.0, %v5056_v51  ;;  %v6354_v12 = vpop.f32.mrb[103].mxu0  ;;  %v4223_v51 = vmul.f32 -1.442695, %v6217_v40  ;;  %v4224_v40 = vmul.f32 -1.442695, %v6224_v0 }
 0x274   : > { %v5060_v14 = vpop.eup %5059  ;;  %5079 = vrcp.f32 %v3070_v8  ;;  %v3071_v3 = vadd.f32 1.0, %v5058_v15  ;;  %v6356_v48 = vpop.f32.mrb[103].mxu1 }
 0x275   : > { %v5062_v20 = vpop.eup %5061  ;;  %5081 = vrcp.f32 %v3072_v55  ;;  %v3073_v34 = vadd.f32 1.0, %v5060_v14  ;;  %v6360_v47 = vpop.f32.mrb[104].mxu0  ;;  %v4222_v14 = vmul.f32 -1.442695, %v6221_v49  ;;  %v4229_v49 = vmul.f32 -1.442695, %v6231_v63 }
 0x276   : > { %v5064_v61 = vpop.eup %5063  ;;  %5083 = vrcp.f32 %v3071_v3  ;;  %v3078_v29 = vadd.f32 1.0, %v5062_v20  ;;  %v6364_v8 = vpop.f32.mrb[104].mxu1  ;;  %v4237_v63 = vmul.f32 -1.442695, %v6253_v26 }
 0x277   : > { %v5066_v31 = vpop.eup %5065  ;;  %5085 = vrcp.f32 %v3073_v34  ;;  %v3080_v58 = vadd.f32 1.0, %v5064_v61  ;;  %v6366_v15 = vpop.f32.mrb[105].mxu0 }
 0x278   : > { %v5068_v38 = vpop.eup %5067  ;;  %5087 = vrcp.f32 %v3078_v29  ;;  %v3079_v25 = vadd.f32 1.0, %v5066_v31  ;;  %v6370_v39 = vpop.f32.mrb[105].mxu1 }
 0x279   : > { %v5070_v54 = vpop.eup %5069  ;;  %v4361_v16 = vpack.c.bf16 %v5068_v38, %v6322_v13  ;;  %5089 = vrcp.f32 %v3080_v58  ;;  %v6372_v3 = vpop.f32.mrb[106].mxu0  ;;  %v4231_v58 = vmul.f32 -1.442695, %v6234_v4  ;;  %v4230_v38 = vmul.f32 -1.442695, %v6237_v23 }
 0x27a   : > { %v5072_v24 = vpop.eup %5071  ;;  %v4362_v55 = vpack.c.bf16 %v5070_v54, %v6328_v17  ;;  %5091 = vrcp.f32 %v3079_v25  ;;  %v6376_v13 = vpop.f32.mrb[106].mxu1 }
 0x27b   : > { %v5074_v20 = vpop.eup %5073  ;;  %3798 = vst [vmem:[%s6176_s29 + $0xc0] sm:$0xff] %v4361_v16  ;;  %5093 = vpow2.f32 %v4216_v35  ;;  %v6378_v34 = vpop.f32.mrb[107].mxu0 }
 0x27c   : > { %v5076_v61 = vpop.eup %5075  ;;  %3799 = vst [vmem:[%s6176_s29 + $0xc8] sm:$0xff] %v4362_v55  ;;  %5095 = vpow2.f32 %v4221_v46  ;;  %v6382_v17 = vpop.f32.mrb[107].mxu1  ;;  %v4232_v46 = vmul.f32 -1.442695, %v6240_v11 }
 0x27d   : > { %v5078_v29 = vpop.eup %5077  ;;  %v4365_v31 = vpack.c.bf16 %v5076_v61, %v5072_v24  ;;  %5097 = vpow2.f32 %v4223_v51  ;;  %v6390_v16 = vpop.f32.mrb[108].mxu0  ;;  %v4239_v24 = vmul.f32 -1.442695, %v6256_v2  ;;  %v4240_v2 = vmul.f32 -1.442695, %v6262_v45 }
 0x27e   : > { %v5080_v35 = vpop.eup %5079  ;;  %v4366_v0 = vpack.c.bf16 %v5078_v29, %v5074_v20  ;;  %5099 = vpow2.f32 %v4222_v14  ;;  %v6393_v23 = vpop.f32.mrb[108].mxu1  ;;  %v4238_v20 = vmul.f32 -1.442695, %v6259_v37 }
 0x27f   : > { %v5082_v25 = vpop.eup %5081  ;;  %3802 = vst [vmem:[%s6176_s29 + $0xe0] sm:$0xff] %v4365_v31  ;;  %5101 = vpow2.f32 %v4224_v40  ;;  %v6395_v55 = vpop.f32.mrb[109].mxu0 }
 0x280   : > { %v5084_v54 = vpop.eup %5083  ;;  %3803 = vst [vmem:[%s6176_s29 + $0xe8] sm:$0xff] %v4366_v0  ;;  %5103 = vpow2.f32 %v4229_v49  ;;  %v6398_v40 = vpop.f32.mrb[109].mxu1 }
 0x281   : > { %v5086_v51 = vpop.eup %5085  ;;  %v4369_v4 = vpack.c.bf16 %v5084_v54, %v5080_v35  ;;  %5105 = vpow2.f32 %v4231_v58  ;;  %v6400_v26 = vpop.f32.mrb[110].mxu0 }
 0x282   : > { %v5088_v14 = vpop.eup %5087  ;;  %v4370_v11 = vpack.c.bf16 %v5086_v51, %v5082_v25  ;;  %5107 = vpow2.f32 %v4230_v38  ;;  %v6406_v49 = vpop.f32.mrb[110].mxu1 }
 0x283   : > { %v6402_v61 = vpop.eup %5089  ;;  %3806 = vst [vmem:[%s6176_s29 + $0x100] sm:$0xff] %v4369_v4  ;;  %5109 = vpow2.f32 %v4232_v46  ;;  %v6408_v29 = vpop.f32.mrb[111].mxu0 }
 0x284   : > { %v5092_v31 = vpop.eup %5091  ;;  %3807 = vst [vmem:[%s6176_s29 + $0x108] sm:$0xff] %v4370_v11  ;;  %5111 = vpow2.f32 %v4237_v63  ;;  %v6411_v58 = vpop.f32.mrb[111].mxu1 }
 0x285   : > { %6706 = vst [vmem:[#allocation3_spill] sm:$0xff] %v6411_v58  ;;  %v5094_v37 = vpop.eup %5093  ;;  %v4373_v35 = vpack.c.bf16 %v5092_v31, %v5088_v14  ;;  %5113 = vpow2.f32 %v4239_v24  ;;  %v6414_v51 = vpop.f32.mrb[112].mxu0 }
 0x286   : > { %v5096_v0 = vpop.eup %5095  ;;  %v3081_v38 = vadd.f32 1.0, %v5094_v37  ;;  %5115 = vpow2.f32 %v4238_v20  ;;  %6707 = vst [vmem:[#allocation4_spill] sm:$0xff] %v6414_v51  ;;  %v6416_v11 = vpop.f32.mrb[112].mxu1  ;;  %v1764_v20 = vsub.s32 4, %v6112_v41 }
 0x287   : > { %v5098_v25 = vpop.eup %5097  ;;  %3810 = vst [vmem:[%s6176_s29 + $0x120] sm:$0xff] %v4373_v35  ;;  %v3086_v46 = vadd.f32 1.0, %v5096_v0  ;;  %5117 = vpow2.f32 %v4240_v2  ;;  %6708 = vst [vmem:[#allocation5_spill] sm:$0xff] %v6416_v11  ;;  %v6418_v58 = vpop.f32.mrb[113].mxu0  ;;  %v1772_v0 = vsub.s32 6, %v6112_v41 }
 0x288   : > { %v5100_v45 = vpop.eup %5099  ;;  %5119 = vrcp.f32 %v3081_v38  ;;  %v3088_v54 = vadd.f32 1.0, %v5098_v25  ;;  %6709 = vst [vmem:[#allocation6_spill] sm:$0xff] %v6418_v58  ;;  %v6421_v31 = vpop.f32.mrb[113].mxu1  ;;  %v1768_v38 = vsub.s32 5, %v6112_v41  ;;  %v6435_v11 = vrot.slane %v6119_v59, %v1764_v20 }
 0x289   : > { %v5102_v4 = vpop.eup %5101  ;;  %5121 = vrcp.f32 %v3086_v46  ;;  %v3087_v63 = vadd.f32 1.0, %v5100_v45  ;;  %6710 = vst [vmem:[#allocation7_spill] sm:$0xff] %v6421_v31  ;;  %v6423_v2 = vpop.f32.mrb[114].mxu0 }
 0x28a   : > { %v5104_v24 = vpop.eup %5103  ;;  %5123 = vrcp.f32 %v3088_v54  ;;  %v3089_v14 = vadd.f32 1.0, %v5102_v4  ;;  %6711 = vst [vmem:[#allocation8_spill] sm:$0xff] %v6423_v2  ;;  %v6427_v25 = vpop.f32.mrb[114].mxu1  ;;  %v1776_v4 = vsub.s32 7, %v6112_v41 }
 0x28b   : > { %v5106_v37 = vpop.eup %5105  ;;  %5125 = vrcp.f32 %v3087_v63  ;;  %v3094_v35 = vadd.f32 1.0, %v5104_v24  ;;  %6712 = vst [vmem:[#allocation9_spill] sm:$0xff] %v6427_v25  ;;  %v6429_v46 = vpop.f32.mrb[115].mxu0 }
 0x28c   : > { %6713 = vst [vmem:[#allocation10_spill] sm:$0xff] %v6429_v46  ;;  %v5108_v45 = vpop.eup %5107  ;;  %5127 = vrcp.f32 %v3089_v14  ;;  %v3096_v54 = vadd.f32 1.0, %v5106_v37  ;;  %v6432_v58 = vpop.f32.mrb[115].mxu1  ;;  %v6438_v46 = vrot.slane %v6119_v59, %v1772_v0  ;;  %v6441_v14 = vrot.slane %v6119_v59, %v1768_v38 }
 0x28d   : > { %6714 = vst [vmem:[#allocation11_spill] sm:$0xff] %v6432_v58  ;;  %v5110_v31 = vpop.eup %5109  ;;  %5129 = vrcp.f32 %v3094_v35  ;;  %v3095_v2 = vadd.f32 1.0, %v5108_v45  ;;  %v4245_v35 = vmul.f32 -1.442695, %v6267_v62  ;;  %v2480_v45 = vpop.f32.mrb[116].mxu0 }
 0x28e   : > { %v5112_v63 = vpop.eup %5111  ;;  %5131 = vrcp.f32 %v3096_v54  ;;  %v3097_v24 = vadd.f32 1.0, %v5110_v31  ;;  %v5449_v31 = vld [vmem:[%s6704_s4] sm:$0xff]  ;;  %v4247_v0 = vmul.f32 -1.442695, %v6270_v18  ;;  %v6451_v59 = vadd.f32 %v2480_v45, %v6435_v11  ;;  %v2593_v38 = vpop.f32.mrb[116].mxu1 }
 0x28f   : > { %v5114_v51 = vpop.eup %5113  ;;  %5133 = vrcp.f32 %v3095_v2  ;;  %v3102_v25 = vadd.f32 1.0, %v5112_v63  ;;  %v6447_v20 = vrot.slane %v5449_v31, %v1776_v4  ;;  %v2482_v63 = vpop.f32.mrb[117].mxu0  ;;  %v4246_v45 = vmul.f32 -1.442695, %v6273_v10 }
 0x290   : > { %v5116_v41 = vpop.eup %5115  ;;  %5135 = vrcp.f32 %v3097_v24  ;;  %v3104_v37 = vadd.f32 1.0, %v5114_v51  ;;  %6715 = vst [vmem:[#allocation12_spill] sm:$0xff] %v6451_v59  ;;  %v6454_v24 = vadd.f32 %v2593_v38, %v6438_v46  ;;  %v6457_v4 = vadd.f32 %v2482_v63, %v6441_v14  ;;  %v2595_v31 = vpop.f32.mrb[117].mxu1 }
 0x291   : > { %v5118_v2 = vpop.eup %5117  ;;  %5137 = vrcp.f32 %v3102_v25  ;;  %v3103_v54 = vadd.f32 1.0, %v5116_v41  ;;  %v2484_v25 = vpop.f32.mrb[118].mxu0  ;;  %v6462_v59 = vadd.f32 %v2595_v31, %v6447_v20  ;;  %v4248_v38 = vmul.f32 -1.442695, %v6278_v60 }
 0x292   : > { %v5120_v51 = vpop.eup %5119  ;;  %5139 = vrcp.f32 %v3104_v37  ;;  %v3105_v62 = vadd.f32 1.0, %v5118_v2  ;;  %6716 = vst [vmem:[#allocation13_spill] sm:$0xff] %v6454_v24  ;;  %6717 = vst [vmem:[#allocation14_spill] sm:$0xff] %v6457_v4  ;;  %v2597_v37 = vpop.f32.mrb[118].mxu1  ;;  %v6466_v63 = vadd.f32 %v2484_v25, %v6435_v11  ;;  %v4255_v60 = vmul.f32 -1.442695, %v6292_v6 }
 0x293   : > { %v5122_v41 = vpop.eup %5121  ;;  %v4374_v18 = vpack.c.bf16 %v5120_v51, %v6402_v61  ;;  %5141 = vrcp.f32 %v3103_v54  ;;  %v2486_v2 = vpop.f32.mrb[119].mxu0  ;;  %v4253_v61 = vmul.f32 -1.442695, %v6287_v28  ;;  %v6471_v10 = vadd.f32 %v2597_v37, %v6438_v46 }
 0x294   : > { %v5124_v58 = vpop.eup %5123  ;;  %5143 = vrcp.f32 %v3105_v62  ;;  %v2599_v4 = vpop.f32.mrb[119].mxu1  ;;  %v6474_v54 = vadd.f32 %v2486_v2, %v6441_v14  ;;  %v4254_v28 = vmul.f32 -1.442695, %v6295_v30  ;;  %v4256_v37 = vmul.f32 -1.442695, %v6298_v33 }
 0x295   : > { %v5126_v24 = vpop.eup %5125  ;;  %3811 = vst [vmem:[%s6176_s29 + $0x128] sm:$0xff] %v4374_v18  ;;  %5145 = vpow2.f32 %v4245_v35  ;;  %v6478_v31 = vadd.f32 %v2599_v4, %v6447_v20  ;;  %v4261_v2 = vmul.f32 -1.442695, %v6304_v9  ;;  %v4263_v6 = vmul.f32 -1.442695, %v6307_v43 }
 0x296   : > { %6718 = vst [vmem:[#allocation15_spill] sm:$0xff] %v6474_v54  ;;  %v5128_v51 = vpop.eup %5127  ;;  %v4377_v62 = vpack.c.bf16 %v5126_v24, %v5122_v41  ;;  %5147 = vpow2.f32 %v4247_v0  ;;  %v2490_v54 = vpop.f32.mrb[120].mxu0  ;;  %v2431_v0 = vadd.f32 %v6320_v7, %v6435_v11 }
 0x297   : > { %v5130_v25 = vpop.eup %5129  ;;  %v4378_v18 = vpack.c.bf16 %v5128_v51, %v5124_v58  ;;  %5149 = vpow2.f32 %v4246_v45  ;;  %v6489_v58 = vadd.f32 %v2490_v54, %v6435_v11  ;;  %v2603_v30 = vpop.f32.mrb[120].mxu1  ;;  %v4262_v54 = vmul.f32 -1.442695, %v6313_v1 }
 0x298   : > { %v5132_v35 = vpop.eup %5131  ;;  %3814 = vst [vmem:[%s6176_s29 + $0x140] sm:$0xff] %v4377_v62  ;;  %5151 = vpow2.f32 %v4248_v38  ;;  %v2492_v4 = vpop.f32.mrb[121].mxu0  ;;  %v6492_v33 = vadd.f32 %v2603_v30, %v6438_v46 }
 0x299   : > { %v5134_v24 = vpop.eup %5133  ;;  %3815 = vst [vmem:[%s6176_s29 + $0x148] sm:$0xff] %v4378_v18  ;;  %5153 = vpow2.f32 %v4253_v61  ;;  %v6495_v9 = vadd.f32 %v2492_v4, %v6441_v14  ;;  %v2605_v38 = vpop.f32.mrb[121].mxu1  ;;  %v4264_v18 = vmul.f32 -1.442695, %v6316_v44 }
 0x29a   : > { %v5136_v41 = vpop.eup %5135  ;;  %v4381_v45 = vpack.c.bf16 %v5134_v24, %v5130_v25  ;;  %5155 = vpow2.f32 %v4255_v60  ;;  %v2494_v43 = vpop.f32.mrb[122].mxu0  ;;  %v6499_v51 = vadd.f32 %v2605_v38, %v6447_v20 }
 0x29b   : > { %v5138_v61 = vpop.eup %5137  ;;  %v4382_v7 = vpack.c.bf16 %v5136_v41, %v5132_v35  ;;  %5157 = vpow2.f32 %v4254_v28  ;;  %v2607_v62 = vpop.f32.mrb[122].mxu1  ;;  %v6504_v24 = vadd.f32 %v2494_v43, %v6435_v11  ;;  %v4145_v28 = vmul.f32 -1.442695, %v2431_v0 }
 0x29c   : > { %v2496_v25 = vpop.f32.mrb[123].mxu0  ;;  %v5140_v60 = vpop.eup %5139  ;;  %3818 = vst [vmem:[%s6176_s29 + $0x160] sm:$0xff] %v4381_v45  ;;  %5159 = vpow2.f32 %v4256_v37  ;;  %v6508_v1 = vadd.f32 %v2607_v62, %v6438_v46 }
 0x29d   : > { %v2609_v30 = vpop.f32.mrb[123].mxu1  ;;  %v5142_v4 = vpop.eup %5141  ;;  %3819 = vst [vmem:[%s6176_s29 + $0x168] sm:$0xff] %v4382_v7  ;;  %5161 = vpow2.f32 %v4261_v2  ;;  %v6511_v35 = vadd.f32 %v2496_v25, %v6441_v14 }
 0x29e   : > { %v5144_v41 = vpop.eup %5143  ;;  %v4385_v37 = vpack.c.bf16 %v5142_v4, %v5138_v61  ;;  %5163 = vpow2.f32 %v4263_v6  ;;  %v6514_v44 = vadd.f32 %v2609_v30, %v6447_v20  ;;  %v2500_v0 = vpop.f32.mrb[124].mxu0 }
 0x29f   : > { %v5146_v45 = vpop.eup %5145  ;;  %v4386_v38 = vpack.c.bf16 %v5144_v41, %v5140_v60  ;;  %5165 = vpow2.f32 %v4262_v54  ;;  %v6519_v25 = vadd.f32 %v2500_v0, %v6435_v11  ;;  %v2613_v61 = vpop.f32.mrb[124].mxu1 }
 0x2a0   : > { %v5148_v43 = vpop.eup %5147  ;;  %3822 = vst [vmem:[%s6176_s29 + $0x180] sm:$0xff] %v4385_v37  ;;  %v3110_v2 = vadd.f32 1.0, %v5146_v45  ;;  %5167 = vpow2.f32 %v4264_v18  ;;  %v2502_v6 = vpop.f32.mrb[125].mxu0  ;;  %v6522_v60 = vadd.f32 %v2613_v61, %v6438_v46 }
 0x2a1   : > { %v5150_v7 = vpop.eup %5149  ;;  %3823 = vst [vmem:[%s6176_s29 + $0x188] sm:$0xff] %v4386_v38  ;;  %v3112_v62 = vadd.f32 1.0, %v5148_v43  ;;  %5169 = vpow2.f32 %v4145_v28  ;;  %6719 = vst [vmem:[#allocation16_spill] sm:$0xff] %v6519_v25  ;;  %v6525_v54 = vadd.f32 %v2502_v6, %v6441_v14  ;;  %v2615_v18 = vpop.f32.mrb[125].mxu1 }
 0x2a2   : > { %v5152_v4 = vpop.eup %5151  ;;  %5171 = vrcp.f32 %v3110_v2  ;;  %v3111_v30 = vadd.f32 1.0, %v5150_v7  ;;  %6720 = vst [vmem:[#allocation17_spill] sm:$0xff] %v6522_v60  ;;  %v2504_v41 = vpop.f32.mrb[126].mxu0  ;;  %v6528_v28 = vadd.f32 %v2615_v18, %v6447_v20 }
 0x2a3   : > { %6721 = vst [vmem:[#allocation18_spill] sm:$0xff] %v6525_v54  ;;  %v5154_v37 = vpop.eup %5153  ;;  %5173 = vrcp.f32 %v3112_v62  ;;  %v3113_v45 = vadd.f32 1.0, %v5152_v4  ;;  %v2617_v38 = vpop.f32.mrb[126].mxu1  ;;  %v6531_v6 = vadd.f32 %v2504_v41, %v6435_v11 }
 0x2a4   : > { %v2506_v43 = vpop.f32.mrb[127].mxu0  ;;  %v5156_v0 = vpop.eup %5155  ;;  %5175 = vrcp.f32 %v3111_v30  ;;  %v3118_v2 = vadd.f32 1.0, %v5154_v37  ;;  %v6534_v62 = vadd.f32 %v2617_v38, %v6438_v46  ;;  %v2544_v37 = vadd.f32 %v6324_v5, %v6438_v46 }
 0x2a5   : > { %v2619_v7 = vpop.f32.mrb[127].mxu1  ;;  %v5158_v25 = vpop.eup %5157  ;;  %5177 = vrcp.f32 %v3113_v45  ;;  %v3120_v61 = vadd.f32 1.0, %v5156_v0  ;;  %v6537_v4 = vadd.f32 %v2506_v43, %v6441_v14  ;;  %v2546_v43 = vadd.f32 %v6331_v19, %v6447_v20 }
 0x2a6   : > { %v5160_v54 = vpop.eup %5159  ;;  %5179 = vrcp.f32 %v3118_v2  ;;  %v3119_v60 = vadd.f32 1.0, %v5158_v25  ;;  %v6542_v45 = vadd.f32 %v2619_v7, %v6447_v20  ;;  %v2433_v25 = vadd.f32 %v6326_v32, %v6441_v14 }
 0x2a7   : > { %6722 = vst [vmem:[#allocation19_spill] sm:$0xff] %v6537_v4  ;;  %v5162_v18 = vpop.eup %5161  ;;  %5181 = vrcp.f32 %v3120_v61  ;;  %v3121_v30 = vadd.f32 1.0, %v5160_v54  ;;  %v2435_v5 = vadd.f32 %v6333_v50, %v6435_v11  ;;  %v2437_v19 = vadd.f32 %v6338_v22, %v6441_v14 }
 0x2a8   : > { %6723 = vst [vmem:[#allocation20_spill] sm:$0xff] %v6542_v45  ;;  %v5164_v41 = vpop.eup %5163  ;;  %5183 = vrcp.f32 %v3119_v60  ;;  %v3126_v0 = vadd.f32 1.0, %v5162_v18  ;;  %v4147_v60 = vmul.f32 -1.442695, %v2544_v37  ;;  %v2548_v18 = vadd.f32 %v6336_v21, %v6438_v46 }
 0x2a9   : > { %v5166_v38 = vpop.eup %5165  ;;  %5185 = vrcp.f32 %v3121_v30  ;;  %v3128_v2 = vadd.f32 1.0, %v5164_v41  ;;  %v4146_v41 = vmul.f32 -1.442695, %v2433_v25  ;;  %v2550_v50 = vadd.f32 %v6340_v27, %v6447_v20 }
 0x2aa   : > { %v5168_v61 = vpop.eup %5167  ;;  %5187 = vrcp.f32 %v3126_v0  ;;  %v3127_v54 = vadd.f32 1.0, %v5166_v38  ;;  %v4148_v0 = vmul.f32 -1.442695, %v2546_v43  ;;  %v4153_v37 = vmul.f32 -1.442695, %v2435_v5 }
 0x2ab   : > { %v5170_v7 = vpop.eup %5169  ;;  %5189 = vrcp.f32 %v3128_v2  ;;  %v3129_v45 = vadd.f32 1.0, %v5168_v61  ;;  %v2441_v21 = vadd.f32 %v6342_v52, %v6435_v11  ;;  %v4155_v25 = vmul.f32 -1.442695, %v2548_v18 }
 0x2ac   : > { %v5172_v32 = vpop.eup %5171  ;;  %5191 = vrcp.f32 %v3127_v54  ;;  %v3010_v30 = vadd.f32 1.0, %v5170_v7  ;;  %v2554_v22 = vadd.f32 %v6344_v42, %v6438_v46  ;;  %v4154_v54 = vmul.f32 -1.442695, %v2437_v19 }
 0x2ad   : > { %v5174_v4 = vpop.eup %5173  ;;  %5193 = vrcp.f32 %v3129_v45  ;;  %v2443_v27 = vadd.f32 %v6346_v56, %v6441_v14  ;;  %v4156_v5 = vmul.f32 -1.442695, %v2550_v50  ;;  %v2556_v52 = vadd.f32 %v6348_v57, %v6447_v20 }
 0x2ae   : > { %v5176_v38 = vpop.eup %5175  ;;  %5195 = vrcp.f32 %v3010_v30  ;;  %v4161_v18 = vmul.f32 -1.442695, %v2441_v21  ;;  %v2445_v42 = vadd.f32 %v6350_v36, %v6435_v11  ;;  %v4163_v56 = vmul.f32 -1.442695, %v2554_v22 }
 0x2af   : > { %v5178_v2 = vpop.eup %5177  ;;  %v4389_v61 = vpack.c.bf16 %v5176_v38, %v5172_v32  ;;  %5197 = vpow2.f32 %v4147_v60  ;;  %v2558_v30 = vadd.f32 %v6352_v53, %v6438_v46  ;;  %v4162_v57 = vmul.f32 -1.442695, %v2443_v27 }
 0x2b0   : > { %v5180_v45 = vpop.eup %5179  ;;  %v4390_v43 = vpack.c.bf16 %v5178_v2, %v5174_v4  ;;  %5199 = vpow2.f32 %v4146_v41  ;;  %v4164_v50 = vmul.f32 -1.442695, %v2556_v52  ;;  %v4169_v36 = vmul.f32 -1.442695, %v2445_v42 }
 0x2b1   : > { %v5182_v7 = vpop.eup %5181  ;;  %3826 = vst [vmem:[%s6176_s29 + $0x1a0] sm:$0xff] %v4389_v61  ;;  %5201 = vpow2.f32 %v4148_v0  ;;  %v4171_v2 = vmul.f32 -1.442695, %v2558_v30 }
 0x2b2   : > { %v5184_v60 = vpop.eup %5183  ;;  %3827 = vst [vmem:[%s6176_s29 + $0x1a8] sm:$0xff] %v4390_v43  ;;  %5203 = vpow2.f32 %v4153_v37 }
 0x2b3   : > { %v5186_v4 = vpop.eup %5185  ;;  %v4393_v32 = vpack.c.bf16 %v5184_v60, %v5180_v45  ;;  %5205 = vpow2.f32 %v4155_v25 }
 0x2b4   : > { %v5188_v41 = vpop.eup %5187  ;;  %v4394_v19 = vpack.c.bf16 %v5186_v4, %v5182_v7  ;;  %5207 = vpow2.f32 %v4154_v54 }
 0x2b5   : > { %v5190_v0 = vpop.eup %5189  ;;  %3830 = vst [vmem:[%s6176_s29 + $0x1c0] sm:$0xff] %v4393_v32  ;;  %5209 = vpow2.f32 %v4156_v5 }
 0x2b6   : > { %v5192_v38 = vpop.eup %5191  ;;  %3831 = vst [vmem:[%s6176_s29 + $0x1c8] sm:$0xff] %v4394_v19  ;;  %5211 = vpow2.f32 %v4161_v18  ;;  %v2447_v19 = vadd.f32 %v6354_v12, %v6441_v14 }
 0x2b7   : > { %v5194_v37 = vpop.eup %5193  ;;  %v4397_v21 = vpack.c.bf16 %v5192_v38, %v5188_v41  ;;  %5213 = vpow2.f32 %v4163_v56 }
 0x2b8   : > { %v6572_v61 = vpop.eup %5195  ;;  %v4398_v53 = vpack.c.bf16 %v5194_v37, %v5190_v0  ;;  %5215 = vpow2.f32 %v4162_v57  ;;  %v2451_v37 = vadd.f32 %v6360_v47, %v6435_v11  ;;  %v2566_v47 = vadd.f32 %v6370_v39, %v6447_v20 }
 0x2b9   : > { %v5198_v25 = vpop.eup %5197  ;;  %3834 = vst [vmem:[%s6176_s29 + $0x1e0] sm:$0xff] %v4397_v21  ;;  %5217 = vpow2.f32 %v4164_v50  ;;  %v2560_v50 = vadd.f32 %v6356_v48, %v6447_v20 }
 0x2ba   : > { %v5200_v22 = vpop.eup %5199  ;;  %3835 = vst [vmem:[%s6176_s29 + $0x1e8] sm:$0xff] %v4398_v53  ;;  %v3012_v45 = vadd.f32 1.0, %v5198_v25  ;;  %5219 = vpow2.f32 %v4169_v36  ;;  %v2564_v53 = vadd.f32 %v6364_v8, %v6438_v46  ;;  %v2455_v8 = vadd.f32 %v6372_v3, %v6435_v11 }
 0x2bb   : > { %v5202_v43 = vpop.eup %5201  ;;  %v3011_v54 = vadd.f32 1.0, %v5200_v22  ;;  %5221 = vpow2.f32 %v4171_v2  ;;  %v4170_v22 = vmul.f32 -1.442695, %v2447_v19  ;;  %v4180_v3 = vmul.f32 -1.442695, %v2566_v47 }
 0x2bc   : > { %v5204_v27 = vpop.eup %5203  ;;  %5223 = vrcp.f32 %v3012_v45  ;;  %v3013_v7 = vadd.f32 1.0, %v5202_v43  ;;  %v2453_v45 = vadd.f32 %v6366_v15, %v6441_v14  ;;  %v4179_v15 = vmul.f32 -1.442695, %v2564_v53 }
 0x2bd   : > { %v5206_v5 = vpop.eup %5205  ;;  %5225 = vrcp.f32 %v3011_v54  ;;  %v3018_v52 = vadd.f32 1.0, %v5204_v27  ;;  %v4172_v54 = vmul.f32 -1.442695, %v2560_v50 }
 0x2be   : > { %v5208_v60 = vpop.eup %5207  ;;  %5227 = vrcp.f32 %v3013_v7  ;;  %v3020_v18 = vadd.f32 1.0, %v5206_v5  ;;  %v4177_v7 = vmul.f32 -1.442695, %v2451_v37  ;;  %v4178_v39 = vmul.f32 -1.442695, %v2453_v45 }
 0x2bf   : > { %v5210_v42 = vpop.eup %5209  ;;  %5229 = vrcp.f32 %v3018_v52  ;;  %v3019_v4 = vadd.f32 1.0, %v5208_v60  ;;  %v2568_v60 = vadd.f32 %v6376_v13, %v6438_v46  ;;  %v2461_v13 = vadd.f32 %v6390_v16, %v6435_v11 }
 0x2c0   : > { %v5212_v32 = vpop.eup %5211  ;;  %5231 = vrcp.f32 %v3020_v18  ;;  %v3021_v56 = vadd.f32 1.0, %v5210_v42 }
 0x2c1   : > { %v5214_v30 = vpop.eup %5213  ;;  %5233 = vrcp.f32 %v3019_v4  ;;  %v3026_v41 = vadd.f32 1.0, %v5212_v32  ;;  %v2457_v4 = vadd.f32 %v6378_v34, %v6441_v14  ;;  %v4187_v34 = vmul.f32 -1.442695, %v2568_v60 }
 0x2c2   : > { %v5216_v57 = vpop.eup %5215  ;;  %5235 = vrcp.f32 %v3021_v56  ;;  %v3028_v0 = vadd.f32 1.0, %v5214_v30  ;;  %v2570_v56 = vadd.f32 %v6382_v17, %v6447_v20  ;;  %v4185_v30 = vmul.f32 -1.442695, %v2455_v8 }
 0x2c3   : > { %v5218_v38 = vpop.eup %5217  ;;  %5237 = vrcp.f32 %v3026_v41  ;;  %v3027_v36 = vadd.f32 1.0, %v5216_v57  ;;  %v2574_v57 = vadd.f32 %v6393_v23, %v6438_v46  ;;  %v4186_v17 = vmul.f32 -1.442695, %v2457_v4 }
 0x2c4   : > { %v5220_v21 = vpop.eup %5219  ;;  %5239 = vrcp.f32 %v3028_v0  ;;  %v3029_v2 = vadd.f32 1.0, %v5218_v38  ;;  %v2463_v38 = vadd.f32 %v6395_v55, %v6441_v14  ;;  %v4188_v16 = vmul.f32 -1.442695, %v2570_v56 }
 0x2c5   : > { %v5222_v25 = vpop.eup %5221  ;;  %5241 = vrcp.f32 %v3027_v36  ;;  %v3034_v12 = vadd.f32 1.0, %v5220_v21  ;;  %v4193_v21 = vmul.f32 -1.442695, %v2461_v13  ;;  %v4195_v23 = vmul.f32 -1.442695, %v2574_v57 }
 0x2c6   : > { %v5224_v48 = vpop.eup %5223  ;;  %5243 = vrcp.f32 %v3029_v2  ;;  %v3036_v43 = vadd.f32 1.0, %v5222_v25 }
 0x2c7   : > { %v5226_v27 = vpop.eup %5225  ;;  %5245 = vrcp.f32 %v3034_v12 }
 0x2c8   : > { %v5228_v5 = vpop.eup %5227  ;;  %v4339_v52 = vpack.c.bf16 %v5226_v27, %v6572_v61  ;;  %5247 = vrcp.f32 %v3036_v43 }
 0x2c9   : > { %v5230_v18 = vpop.eup %5229  ;;  %v4340_v42 = vpack.c.bf16 %v5228_v5, %v5224_v48  ;;  %5249 = vpow2.f32 %v4170_v22  ;;  %v4194_v22 = vmul.f32 -1.442695, %v2463_v38  ;;  %v6724_v38 = vld [vmem:[#allocation3_spill] sm:$0xff] }
 0x2ca   : > { %v5232_v32 = vpop.eup %5231  ;;  %3776 = vst [vmem:[%s6176_s29 + $0x10] sm:$0xff] %v4339_v52  ;;  %5251 = vpow2.f32 %v4172_v54 }
 0x2cb   : > { %v5234_v61 = vpop.eup %5233  ;;  %3777 = vst [vmem:[%s6176_s29 + $0x18] sm:$0xff] %v4340_v42  ;;  %5253 = vpow2.f32 %v4177_v7 }
 0x2cc   : > { %v5236_v41 = vpop.eup %5235  ;;  %v4343_v19 = vpack.c.bf16 %v5234_v61, %v5230_v18  ;;  %5255 = vpow2.f32 %v4179_v15 }
 0x2cd   : > { %v5238_v0 = vpop.eup %5237  ;;  %v4344_v50 = vpack.c.bf16 %v5236_v41, %v5232_v32  ;;  %5257 = vpow2.f32 %v4178_v39 }
 0x2ce   : > { %v5240_v36 = vpop.eup %5239  ;;  %3780 = vst [vmem:[%s6176_s29 + $0x30] sm:$0xff] %v4343_v19  ;;  %5259 = vpow2.f32 %v4180_v3  ;;  %v2576_v3 = vadd.f32 %v6398_v40, %v6447_v20  ;;  %v2578_v19 = vadd.f32 %v6406_v49, %v6438_v46  ;;  %v6725_v49 = vld [vmem:[#allocation4_spill] sm:$0xff] }
 0x2cf   : > { %v5242_v37 = vpop.eup %5241  ;;  %3781 = vst [vmem:[%s6176_s29 + $0x38] sm:$0xff] %v4344_v50  ;;  %5261 = vpow2.f32 %v4185_v30  ;;  %v2465_v30 = vadd.f32 %v6400_v26, %v6435_v11 }
 0x2d0   : > { %v5244_v2 = vpop.eup %5243  ;;  %v4347_v53 = vpack.c.bf16 %v5242_v37, %v5238_v0  ;;  %5263 = vpow2.f32 %v4187_v34  ;;  %v2467_v0 = vadd.f32 %v6408_v29, %v6441_v14  ;;  %v4203_v29 = vmul.f32 -1.442695, %v2578_v19 }
 0x2d1   : > { %v6607_v25 = vpop.eup %5245  ;;  %v4348_v12 = vpack.c.bf16 %v5244_v2, %v5240_v36  ;;  %5265 = vpow2.f32 %v4186_v17  ;;  %v4196_v17 = vmul.f32 -1.442695, %v2576_v3  ;;  %v2580_v36 = vadd.f32 %v6724_v38, %v6447_v20 }
 0x2d2   : > { %v6609_v55 = vpop.eup %5247  ;;  %3784 = vst [vmem:[%s6176_s29 + $0x50] sm:$0xff] %v4347_v53  ;;  %5267 = vpow2.f32 %v4188_v16  ;;  %v4201_v37 = vmul.f32 -1.442695, %v2465_v30 }
 0x2d3   : > { %v5250_v45 = vpop.eup %5249  ;;  %3785 = vst [vmem:[%s6176_s29 + $0x58] sm:$0xff] %v4348_v12  ;;  %5269 = vpow2.f32 %v4193_v21  ;;  %v2471_v21 = vadd.f32 %v6725_v49, %v6435_v11 }
 0x2d4   : > { %v5252_v48 = vpop.eup %5251  ;;  %v3035_v43 = vadd.f32 1.0, %v5250_v45  ;;  %5271 = vpow2.f32 %v4195_v23  ;;  %v6726_v23 = vld [vmem:[#allocation5_spill] sm:$0xff] }
 0x2d5   : > { %v5254_v54 = vpop.eup %5253  ;;  %v3037_v47 = vadd.f32 1.0, %v5252_v48  ;;  %5273 = vpow2.f32 %v4194_v22  ;;  %v2584_v12 = vadd.f32 %v6726_v23, %v6438_v46  ;;  %v4202_v48 = vmul.f32 -1.442695, %v2467_v0 }
 0x2d6   : > { %v5256_v27 = vpop.eup %5255  ;;  %5275 = vrcp.f32 %v3035_v43  ;;  %v3042_v7 = vadd.f32 1.0, %v5254_v54  ;;  %v6727_v43 = vld [vmem:[#allocation6_spill] sm:$0xff] }
 0x2d7   : > { %v5258_v8 = vpop.eup %5257  ;;  %5277 = vrcp.f32 %v3037_v47  ;;  %v3044_v5 = vadd.f32 1.0, %v5256_v27  ;;  %v2473_v54 = vadd.f32 %v6727_v43, %v6441_v14  ;;  %v4204_v27 = vmul.f32 -1.442695, %v2580_v36 }
 0x2d8   : > { %v5260_v52 = vpop.eup %5259  ;;  %5279 = vrcp.f32 %v3042_v7  ;;  %v3043_v15 = vadd.f32 1.0, %v5258_v8  ;;  %v6728_v7 = vld [vmem:[#allocation7_spill] sm:$0xff] }
 0x2d9   : > { %v5262_v60 = vpop.eup %5261  ;;  %5281 = vrcp.f32 %v3044_v5  ;;  %v3045_v18 = vadd.f32 1.0, %v5260_v52  ;;  %v4209_v5 = vmul.f32 -1.442695, %v2471_v21  ;;  %v6729_v52 = vld [vmem:[#allocation8_spill] sm:$0xff]  ;;  %v4210_v3 = vmul.f32 -1.442695, %v2473_v54 }
 0x2da   : > { %v5264_v42 = vpop.eup %5263  ;;  %5283 = vrcp.f32 %v3043_v15  ;;  %v3050_v39 = vadd.f32 1.0, %v5262_v60 }
 0x2db   : > { %v5266_v4 = vpop.eup %5265  ;;  %5285 = vrcp.f32 %v3045_v18  ;;  %v3052_v32 = vadd.f32 1.0, %v5264_v42  ;;  %v4211_v18 = vmul.f32 -1.442695, %v2584_v12  ;;  %v6730_v42 = vld [vmem:[#allocation9_spill] sm:$0xff] }
 0x2dc   : > { %v5268_v56 = vpop.eup %5267  ;;  %5287 = vrcp.f32 %v3050_v39  ;;  %v3051_v61 = vadd.f32 1.0, %v5266_v4  ;;  %v2588_v39 = vadd.f32 %v6730_v42, %v6438_v46 }
 0x2dd   : > { %v5270_v13 = vpop.eup %5269  ;;  %5289 = vrcp.f32 %v3052_v32  ;;  %v3053_v41 = vadd.f32 1.0, %v5268_v56  ;;  %v6731_v56 = vld [vmem:[#allocation10_spill] sm:$0xff] }
 0x2de   : > { %v5272_v34 = vpop.eup %5271  ;;  %5291 = vrcp.f32 %v3051_v61  ;;  %v3058_v57 = vadd.f32 1.0, %v5270_v13  ;;  %v2477_v61 = vadd.f32 %v6731_v56, %v6441_v14  ;;  %v6732_v13 = vld [vmem:[#allocation11_spill] sm:$0xff]  ;;  %v4219_v0 = vmul.f32 -1.442695, %v2588_v39 }
 0x2df   : > { %v5274_v50 = vpop.eup %5273  ;;  %5293 = vrcp.f32 %v3053_v41  ;;  %v3060_v40 = vadd.f32 1.0, %v5272_v34  ;;  %v2590_v41 = vadd.f32 %v6732_v13, %v6447_v20 }
 0x2e0   : > { %v5276_v26 = vpop.eup %5275  ;;  %5295 = vrcp.f32 %v3058_v57  ;;  %v3059_v16 = vadd.f32 1.0, %v5274_v50  ;;  %v4218_v14 = vmul.f32 -1.442695, %v2477_v61 }
 0x2e1   : > { %v5278_v2 = vpop.eup %5277  ;;  %v4351_v53 = vpack.c.bf16 %v5276_v26, %v6607_v25  ;;  %5297 = vrcp.f32 %v3060_v40  ;;  %v2586_v25 = vadd.f32 %v6728_v7, %v6447_v20  ;;  %v4220_v38 = vmul.f32 -1.442695, %v2590_v41 }
 0x2e2   : > { %v5280_v22 = vpop.eup %5279  ;;  %v4352_v45 = vpack.c.bf16 %v5278_v2, %v6609_v55  ;;  %5299 = vrcp.f32 %v3059_v16  ;;  %v2475_v55 = vadd.f32 %v6729_v52, %v6435_v11  ;;  %v4228_v41 = vmul.f32 -1.442695, %v6462_v59 }
 0x2e3   : > { %v5282_v47 = vpop.eup %5281  ;;  %3788 = vst [vmem:[%s6176_s29 + $0x70] sm:$0xff] %v4351_v53  ;;  %5301 = vpow2.f32 %v4196_v17  ;;  %v4212_v11 = vmul.f32 -1.442695, %v2586_v25  ;;  %v4236_v59 = vmul.f32 -1.442695, %v6478_v31 }
 0x2e4   : > { %v5284_v8 = vpop.eup %5283  ;;  %3789 = vst [vmem:[%s6176_s29 + $0x78] sm:$0xff] %v4352_v45  ;;  %5303 = vpow2.f32 %v4201_v37  ;;  %v4217_v46 = vmul.f32 -1.442695, %v2475_v55  ;;  %v4244_v31 = vmul.f32 -1.442695, %v6499_v51 }
 0x2e5   : > { %v5286_v15 = vpop.eup %5285  ;;  %v4355_v60 = vpack.c.bf16 %v5284_v8, %v5280_v22  ;;  %5305 = vpow2.f32 %v4203_v29 }
 0x2e6   : > { %v5288_v4 = vpop.eup %5287  ;;  %v4356_v32 = vpack.c.bf16 %v5286_v15, %v5282_v47  ;;  %5307 = vpow2.f32 %v4202_v48 }
 0x2e7   : > { %v5290_v30 = vpop.eup %5289  ;;  %3792 = vst [vmem:[%s6176_s29 + $0x90] sm:$0xff] %v4355_v60  ;;  %5309 = vpow2.f32 %v4204_v27 }
 0x2e8   : > { %v5292_v19 = vpop.eup %5291  ;;  %3793 = vst [vmem:[%s6176_s29 + $0x98] sm:$0xff] %v4356_v32  ;;  %5311 = vpow2.f32 %v4209_v5  ;;  %v6734_v32 = vld [vmem:[#allocation13_spill] sm:$0xff] }
 0x2e9   : > { %v5294_v34 = vpop.eup %5293  ;;  %v4359_v57 = vpack.c.bf16 %v5292_v19, %v5288_v4  ;;  %5313 = vpow2.f32 %v4211_v18  ;;  %v6733_v18 = vld [vmem:[#allocation12_spill] sm:$0xff] }
 0x2ea   : > { %v5296_v50 = vpop.eup %5295  ;;  %v4360_v40 = vpack.c.bf16 %v5294_v34, %v5290_v30  ;;  %5315 = vpow2.f32 %v4210_v3  ;;  %v4225_v42 = vmul.f32 -1.442695, %v6733_v18  ;;  %v4227_v3 = vmul.f32 -1.442695, %v6734_v32  ;;  %v6735_v30 = vld [vmem:[#allocation14_spill] sm:$0xff] }
 0x2eb   : > { %v5298_v17 = vpop.eup %5297  ;;  %3796 = vst [vmem:[%s6176_s29 + $0xb0] sm:$0xff] %v4359_v57  ;;  %5317 = vpow2.f32 %v4212_v11  ;;  %v4226_v11 = vmul.f32 -1.442695, %v6735_v30 }
 0x2ec   : > { %v5300_v36 = vpop.eup %5299  ;;  %3797 = vst [vmem:[%s6176_s29 + $0xb8] sm:$0xff] %v4360_v40  ;;  %5319 = vpow2.f32 %v4217_v46  ;;  %v4233_v46 = vmul.f32 -1.442695, %v6466_v63  ;;  %v4241_v63 = vmul.f32 -1.442695, %v6489_v58 }
 0x2ed   : > { %v5302_v20 = vpop.eup %5301  ;;  %v4363_v26 = vpack.c.bf16 %v5300_v36, %v5296_v50  ;;  %5321 = vpow2.f32 %v4219_v0  ;;  %v4235_v0 = vmul.f32 -1.442695, %v6471_v10  ;;  %v4243_v10 = vmul.f32 -1.442695, %v6492_v33 }
 0x2ee   : > { %v5304_v16 = vpop.eup %5303  ;;  %v3061_v37 = vadd.f32 1.0, %v5302_v20  ;;  %5323 = vpow2.f32 %v4218_v14  ;;  %v6736_v14 = vld [vmem:[#allocation15_spill] sm:$0xff]  ;;  %v4249_v58 = vmul.f32 -1.442695, %v6504_v24 }
 0x2ef   : > { %v5306_v49 = vpop.eup %5305  ;;  %3800 = vst [vmem:[%s6176_s29 + $0xd0] sm:$0xff] %v4363_v26  ;;  %v3066_v21 = vadd.f32 1.0, %v5304_v16  ;;  %5325 = vpow2.f32 %v4220_v38 }
 0x2f0   : > { %v5308_v2 = vpop.eup %5307  ;;  %5327 = vrcp.f32 %v3061_v37  ;;  %v3068_v53 = vadd.f32 1.0, %v5306_v49  ;;  %v4242_v49 = vmul.f32 -1.442695, %v6495_v9 }
 0x2f1   : > { %v5310_v29 = vpop.eup %5309  ;;  %5329 = vrcp.f32 %v3066_v21  ;;  %v3067_v23 = vadd.f32 1.0, %v5308_v2 }
 0x2f2   : > { %v5312_v12 = vpop.eup %5311  ;;  %5331 = vrcp.f32 %v3068_v53  ;;  %v3069_v22 = vadd.f32 1.0, %v5310_v29 }
 0x2f3   : > { %v5314_v45 = vpop.eup %5313  ;;  %5333 = vrcp.f32 %v3067_v23  ;;  %v3074_v48 = vadd.f32 1.0, %v5312_v12 }
 0x2f4   : > { %v5316_v43 = vpop.eup %5315  ;;  %5335 = vrcp.f32 %v3069_v22  ;;  %v3076_v54 = vadd.f32 1.0, %v5314_v45 }
 0x2f5   : > { %v5318_v47 = vpop.eup %5317  ;;  %5337 = vrcp.f32 %v3074_v48  ;;  %v3075_v27 = vadd.f32 1.0, %v5316_v43 }
 0x2f6   : > { %v5320_v7 = vpop.eup %5319  ;;  %5339 = vrcp.f32 %v3076_v54  ;;  %v3077_v25 = vadd.f32 1.0, %v5318_v47 }
 0x2f7   : > { %v5322_v8 = vpop.eup %5321  ;;  %5341 = vrcp.f32 %v3075_v27  ;;  %v3082_v5 = vadd.f32 1.0, %v5320_v7 }
 0x2f8   : > { %v5324_v52 = vpop.eup %5323  ;;  %5343 = vrcp.f32 %v3077_v25  ;;  %v3084_v55 = vadd.f32 1.0, %v5322_v8 }
 0x2f9   : > { %v5326_v15 = vpop.eup %5325  ;;  %5345 = vrcp.f32 %v3082_v5  ;;  %v3083_v60 = vadd.f32 1.0, %v5324_v52 }
 0x2fa   : > { %v5328_v39 = vpop.eup %5327  ;;  %5347 = vrcp.f32 %v3084_v55  ;;  %v3085_v4 = vadd.f32 1.0, %v5326_v15 }
 0x2fb   : > { %v5330_v56 = vpop.eup %5329  ;;  %v4364_v61 = vpack.c.bf16 %v5328_v39, %v5298_v17  ;;  %5349 = vrcp.f32 %v3083_v60  ;;  %v4234_v17 = vmul.f32 -1.442695, %v6736_v14 }
 0x2fc   : > { %v5332_v13 = vpop.eup %5331  ;;  %5351 = vrcp.f32 %v3085_v4 }
 0x2fd   : > { %v5334_v19 = vpop.eup %5333  ;;  %3801 = vst [vmem:[%s6176_s29 + $0xd8] sm:$0xff] %v4364_v61  ;;  %5353 = vpow2.f32 %v4225_v42  ;;  %v4250_v61 = vmul.f32 -1.442695, %v6511_v35  ;;  %v4260_v35 = vmul.f32 -1.442695, %v6528_v28  ;;  %v6741_v28 = vld [vmem:[#allocation20_spill] sm:$0xff] }
 0x2fe   : > { %v5336_v34 = vpop.eup %5335  ;;  %v4367_v57 = vpack.c.bf16 %v5334_v19, %v5330_v56  ;;  %5355 = vpow2.f32 %v4227_v3  ;;  %v4251_v3 = vmul.f32 -1.442695, %v6508_v1 }
 0x2ff   : > { %v5338_v50 = vpop.eup %5337  ;;  %v4368_v40 = vpack.c.bf16 %v5336_v34, %v5332_v13  ;;  %5357 = vpow2.f32 %v4226_v11  ;;  %v4252_v11 = vmul.f32 -1.442695, %v6514_v44 }
 0x300   : > { %v5340_v38 = vpop.eup %5339  ;;  %3804 = vst [vmem:[%s6176_s29 + $0xf0] sm:$0xff] %v4367_v57  ;;  %5359 = vpow2.f32 %v4228_v41  ;;  %v6737_v41 = vld [vmem:[#allocation16_spill] sm:$0xff]  ;;  %v6738_v57 = vld [vmem:[#allocation17_spill] sm:$0xff] }
 0x301   : > { %v5342_v36 = vpop.eup %5341  ;;  %3805 = vst [vmem:[%s6176_s29 + $0xf8] sm:$0xff] %v4368_v40  ;;  %5361 = vpow2.f32 %v4233_v46  ;;  %v4257_v19 = vmul.f32 -1.442695, %v6737_v41  ;;  %v6739_v40 = vld [vmem:[#allocation18_spill] sm:$0xff] }
 0x302   : > { %v5344_v20 = vpop.eup %5343  ;;  %v4371_v26 = vpack.c.bf16 %v5342_v36, %v5338_v50  ;;  %5363 = vpow2.f32 %v4235_v0  ;;  %v4259_v0 = vmul.f32 -1.442695, %v6738_v57  ;;  %v4258_v14 = vmul.f32 -1.442695, %v6739_v40 }
 0x303   : > { %v5346_v16 = vpop.eup %5345  ;;  %v4372_v37 = vpack.c.bf16 %v5344_v20, %v5340_v38  ;;  %5365 = vpow2.f32 %v4234_v17  ;;  %v4265_v38 = vmul.f32 -1.442695, %v6531_v6 }
 0x304   : > { %v5348_v21 = vpop.eup %5347  ;;  %3808 = vst [vmem:[%s6176_s29 + $0x110] sm:$0xff] %v4371_v26  ;;  %5367 = vpow2.f32 %v4236_v59 }
 0x305   : > { %v5350_v2 = vpop.eup %5349  ;;  %3809 = vst [vmem:[%s6176_s29 + $0x118] sm:$0xff] %v4372_v37  ;;  %5369 = vpow2.f32 %v4241_v63  ;;  %v4267_v63 = vmul.f32 -1.442695, %v6534_v62 }
 0x306   : > { %v5352_v53 = vpop.eup %5351  ;;  %v4375_v29 = vpack.c.bf16 %v5350_v2, %v5346_v16  ;;  %5371 = vpow2.f32 %v4243_v10  ;;  %v6740_v10 = vld [vmem:[#allocation19_spill] sm:$0xff] }
 0x307   : > { %v5354_v33 = vpop.eup %5353  ;;  %v4376_v23 = vpack.c.bf16 %v5352_v53, %v5348_v21  ;;  %5373 = vpow2.f32 %v4242_v49  ;;  %v4266_v16 = vmul.f32 -1.442695, %v6740_v10  ;;  %v4268_v49 = vmul.f32 -1.442695, %v6741_v28 }
 0x308   : > { %v5356_v12 = vpop.eup %5355  ;;  %3812 = vst [vmem:[%s6176_s29 + $0x130] sm:$0xff] %v4375_v29  ;;  %v3090_v9 = vadd.f32 1.0, %v5354_v33  ;;  %5375 = vpow2.f32 %v4244_v31 }
 0x309   : > { %v5358_v22 = vpop.eup %5357  ;;  %3813 = vst [vmem:[%s6176_s29 + $0x138] sm:$0xff] %v4376_v23  ;;  %v3092_v45 = vadd.f32 1.0, %v5356_v12  ;;  %5377 = vpow2.f32 %v4249_v58 }
 0x30a   : > { %v5360_v51 = vpop.eup %5359  ;;  %5379 = vrcp.f32 %v3090_v9  ;;  %v3091_v48 = vadd.f32 1.0, %v5358_v22 }
 0x30b   : > { %v5362_v43 = vpop.eup %5361  ;;  %5381 = vrcp.f32 %v3092_v45  ;;  %v3093_v24 = vadd.f32 1.0, %v5360_v51 }
 0x30c   : > { %v5364_v54 = vpop.eup %5363  ;;  %5383 = vrcp.f32 %v3091_v48  ;;  %v3098_v47 = vadd.f32 1.0, %v5362_v43 }
 0x30d   : > { %v5366_v27 = vpop.eup %5365  ;;  %5385 = vrcp.f32 %v3093_v24  ;;  %v3100_v7 = vadd.f32 1.0, %v5364_v54 }
 0x30e   : > { %v5368_v25 = vpop.eup %5367  ;;  %5387 = vrcp.f32 %v3098_v47  ;;  %v3099_v8 = vadd.f32 1.0, %v5366_v27 }
 0x30f   : > { %v5370_v5 = vpop.eup %5369  ;;  %5389 = vrcp.f32 %v3100_v7  ;;  %v3101_v52 = vadd.f32 1.0, %v5368_v25 }
 0x310   : > { %v5372_v55 = vpop.eup %5371  ;;  %5391 = vrcp.f32 %v3099_v8  ;;  %v3106_v15 = vadd.f32 1.0, %v5370_v5 }
 0x311   : > { %v5374_v60 = vpop.eup %5373  ;;  %5393 = vrcp.f32 %v3101_v52  ;;  %v3108_v18 = vadd.f32 1.0, %v5372_v55 }
 0x312   : > { %v5376_v42 = vpop.eup %5375  ;;  %5395 = vrcp.f32 %v3106_v15  ;;  %v3107_v39 = vadd.f32 1.0, %v5374_v60 }
 0x313   : > { %v5378_v4 = vpop.eup %5377  ;;  %5397 = vrcp.f32 %v3108_v18  ;;  %v3109_v32 = vadd.f32 1.0, %v5376_v42 }
 0x314   : > { %v5380_v56 = vpop.eup %5379  ;;  %5399 = vrcp.f32 %v3107_v39  ;;  %v3114_v2 = vadd.f32 1.0, %v5378_v4 }
 0x315   : > { %v5382_v30 = vpop.eup %5381  ;;  %5401 = vrcp.f32 %v3109_v32 }
 0x316   : > { %v5384_v13 = vpop.eup %5383  ;;  %5403 = vpow2.f32 %v4251_v3 }
 0x317   : > { %v5386_v46 = vpop.eup %5385  ;;  %v4379_v34 = vpack.c.bf16 %v5384_v13, %v5380_v56  ;;  %5405 = vpow2.f32 %v4250_v61 }
 0x318   : > { %v5388_v50 = vpop.eup %5387  ;;  %v4380_v1 = vpack.c.bf16 %v5386_v46, %v5382_v30  ;;  %5407 = vpow2.f32 %v4252_v11 }
 0x319   : > { %v5390_v17 = vpop.eup %5389  ;;  %3816 = vst [vmem:[%s6176_s29 + $0x150] sm:$0xff] %v4379_v34  ;;  %5409 = vpow2.f32 %v4257_v19 }
 0x31a   : > { %v5392_v44 = vpop.eup %5391  ;;  %3817 = vst [vmem:[%s6176_s29 + $0x158] sm:$0xff] %v4380_v1  ;;  %5411 = vpow2.f32 %v4259_v0 }
 0x31b   : > { %v5394_v59 = vpop.eup %5393  ;;  %v4383_v36 = vpack.c.bf16 %v5392_v44, %v5388_v50  ;;  %5413 = vpow2.f32 %v4258_v14 }
 0x31c   : > { %v5396_v20 = vpop.eup %5395  ;;  %v4384_v26 = vpack.c.bf16 %v5394_v59, %v5390_v17  ;;  %5415 = vpow2.f32 %v4260_v35 }
 0x31d   : > { %v5398_v37 = vpop.eup %5397  ;;  %3820 = vst [vmem:[%s6176_s29 + $0x170] sm:$0xff] %v4383_v36  ;;  %5417 = vpow2.f32 %v4265_v38 }
 0x31e   : > { %v5400_v21 = vpop.eup %5399  ;;  %3821 = vst [vmem:[%s6176_s29 + $0x178] sm:$0xff] %v4384_v26  ;;  %5419 = vpow2.f32 %v4267_v63 }
 0x31f   : > { %v5402_v6 = vpop.eup %5401  ;;  %v4387_v31 = vpack.c.bf16 %v5400_v21, %v5396_v20  ;;  %5421 = vpow2.f32 %v4266_v16 }
 0x320   : > { %v4388_v62 = vpack.c.bf16 %v5402_v6, %v5398_v37  ;;  %v5404_v58 = vpop.eup %5403  ;;  %5423 = vpow2.f32 %v4268_v49 }
 0x321   : > { %3824 = vst [vmem:[%s6176_s29 + $0x190] sm:$0xff] %v4387_v31  ;;  %v5406_v53 = vpop.eup %5405  ;;  %v3116_v29 = vadd.f32 1.0, %v5404_v58  ;;  %5425 = vrcp.f32 %v3114_v2 }
 0x322   : > { %3825 = vst [vmem:[%s6176_s29 + $0x198] sm:$0xff] %v4388_v62  ;;  %v5408_v33 = vpop.eup %5407  ;;  %v3115_v23 = vadd.f32 1.0, %v5406_v53 }
 0x323   : > { %v5410_v12 = vpop.eup %5409  ;;  %5427 = vrcp.f32 %v3116_v29  ;;  %v3117_v9 = vadd.f32 1.0, %v5408_v33 }
 0x324   : > { %v5412_v22 = vpop.eup %5411  ;;  %5429 = vrcp.f32 %v3115_v23  ;;  %v3122_v45 = vadd.f32 1.0, %v5410_v12 }
 0x325   : > { %v5414_v51 = vpop.eup %5413  ;;  %5431 = vrcp.f32 %v3117_v9  ;;  %v3124_v48 = vadd.f32 1.0, %v5412_v22 }
 0x326   : > { %v5416_v43 = vpop.eup %5415  ;;  %5433 = vrcp.f32 %v3122_v45  ;;  %v3123_v24 = vadd.f32 1.0, %v5414_v51 }
 0x327   : > { %v5418_v54 = vpop.eup %5417  ;;  %5435 = vrcp.f32 %v3124_v48  ;;  %v3125_v47 = vadd.f32 1.0, %v5416_v43 }
 0x328   : > { %v5420_v27 = vpop.eup %5419  ;;  %5437 = vrcp.f32 %v3123_v24  ;;  %v3130_v7 = vadd.f32 1.0, %v5418_v54 }
 0x329   : > { %v5422_v25 = vpop.eup %5421  ;;  %5439 = vrcp.f32 %v3125_v47  ;;  %v3132_v8 = vadd.f32 1.0, %v5420_v27 }
 0x32a   : > { %v5424_v5 = vpop.eup %5423  ;;  %5441 = vrcp.f32 %v3130_v7  ;;  %v3131_v52 = vadd.f32 1.0, %v5422_v25 }
 0x32b   : > { %5443 = vrcp.f32 %v3132_v8  ;;  %v3133_v55 = vadd.f32 1.0, %v5424_v5  ;;  %v5426_v15 = vpop.eup %5425 }
 0x32c   : > { %5445 = vrcp.f32 %v3131_v52 }
 0x32d   : > { %v5428_v60 = vpop.eup %5427  ;;  %5447 = vrcp.f32 %v3133_v55 }
 0x32e   : > { %v5430_v18 = vpop.eup %5429 }
 0x32f   : > { %v5432_v42 = vpop.eup %5431  ;;  %v4391_v39 = vpack.c.bf16 %v5430_v18, %v5426_v15 }
 0x330   : > { %v5434_v4 = vpop.eup %5433  ;;  %v4392_v32 = vpack.c.bf16 %v5432_v42, %v5428_v60 }
 0x331   : > { %v5436_v3 = vpop.eup %5435  ;;  %3828 = vst [vmem:[%s6176_s29 + $0x1b0] sm:$0xff] %v4391_v39 }
 0x332   : > { %v5438_v56 = vpop.eup %5437  ;;  %3829 = vst [vmem:[%s6176_s29 + $0x1b8] sm:$0xff] %v4392_v32 }
 0x333   : > { %v5440_v61 = vpop.eup %5439  ;;  %v4395_v30 = vpack.c.bf16 %v5438_v56, %v5434_v4 }
 0x334   : > { %v5442_v11 = vpop.eup %5441  ;;  %v4396_v13 = vpack.c.bf16 %v5440_v61, %v5436_v3 }
 0x335   : > { %v5444_v41 = vpop.eup %5443  ;;  %3832 = vst [vmem:[%s6176_s29 + $0x1d0] sm:$0xff] %v4395_v30 }
 0x336   : > { %v5446_v19 = vpop.eup %5445  ;;  %3833 = vst [vmem:[%s6176_s29 + $0x1d8] sm:$0xff] %v4396_v13 }
 0x337   : > { %v5448_v46 = vpop.eup %5447  ;;  %v4399_v34 = vpack.c.bf16 %v5446_v19, %v5442_v11 }
 0x338   : > { %v4400_v57 = vpack.c.bf16 %v5448_v46, %v5444_v41 }
 0x339   : > { %3836 = vst [vmem:[%s6176_s29 + $0x1f0] sm:$0xff] %v4399_v34 }
 0x33a   : > { %3837 = vst [vmem:[%s6176_s29 + $0x1f8] sm:$0xff] %v4400_v57 }
 0x33b PF: > { %s15_s20 = sadd.s32 1, %s5472_s20   ;;  %s6742_s18 = smov %s5468_s19 }
 0x33c   : > { %p12_p5 = scmp.ge.s32.totalorder %s15_s20, 4   ;;  %s6743_s19 = smov %s6745_s21 }
 0x33e   :  { %14 = sbr.rel (!%p12_p5) target bundleno = 2 (0x2), region = 78 }

</bundles_post_ra>
